<compile_context>
chip_gen: v5e
topology: v5e:2x2
jax: 0.10.0
libtpu: 0.0.40
codegen_flags: <defaults>
</compile_context>

<pallas_src>
import jax
import jax.numpy as jnp
from jax import lax
from jax.experimental import pallas as pl
from jax.experimental.pallas import tpu as pltpu


def _make_vq_kernel(tile, n_valid, needs_mask, mm_dtype):
    """Builds the per-tile kernel (tile/n_valid/needs_mask/mm_dtype are static)."""

    def kernel(x_ref, e_ref, e2_ref, q_ref, idx_ref, loss_ref, cnt_ref):
        """One grid step quantizes a tile of `tile` flattened latent vectors.

        x_ref   : [TN, D]   flat latents tile (f32)
        e_ref   : [Kp, D]   codebook, padded rows are zero (f32, exact values)
        e2_ref  : [1, Kp]   ||e_k||^2; padded codes hold a huge sentinel so
                            they can never win the argmin
        q_ref   : [TN, D]   quantized output tile (f32)
        idx_ref : [TN, 1]   argmin code index per row (int32)
        loss_ref: [1,1,128] per-tile sum of squared error; the scalar is
                            replicated across all 128 lanes and the epilogue
                            reads lane [., 0, 0] only (do NOT lane-sum)
        cnt_ref : [1,1,Kp]  per-tile per-code counts (partial output)
        """
        x = x_ref[...]                                   # [TN, D]  f32
        e = e_ref[...]                                   # [Kp, D]  f32
        e2 = e2_ref[...]                                 # [1, Kp]  f32

        # dist = ||e||^2 - 2 x.e  (per-row ||x||^2 dropped: argmin is invariant
        # to it and the loss below uses (q - x) directly).  The -2 is folded
        # into a cheap [TN, D] pre-scale of x instead of a [TN, Kp]
        # multiply+subtract, and the single resident f32 codebook is cast to
        # the MXU dtype here (Kp*D elements per step, negligible) instead of
        # shipping a second transposed copy.
        xs = (x * -2.0).astype(mm_dtype)                 # [TN, D]
        xe = lax.dot_general(                            # MXU, A @ B^T ("NT")
            xs, e.astype(mm_dtype),
            dimension_numbers=(((1,), (1,)), ((), ())),
            preferred_element_type=jnp.float32)          # [TN, Kp]
        # TODO(synk): for D <= ~16 the MXU is >95% underfilled here; a VPU
        # broadcast formulation (unrolled over D) would avoid paying full MXU
        # cadence for near-empty passes.
        dist = xe + e2                                   # one [TN,Kp] add pass

        # First-occurrence argmin (matches torch.argmin tie-breaking).
        # TODO(synk): a single-pass ordered-int trick (bitcast + OR-in lane id,
        # one lane-min) drops one reduction but allows near-tie drift.
        kp = dist.shape[1]
        min_d = jnp.min(dist, axis=1, keepdims=True)
        iota_k = lax.broadcasted_iota(jnp.int32, dist.shape, 1)
        idx = jnp.min(jnp.where(dist <= min_d, iota_k, kp), axis=1,
                      keepdims=True)                     # [TN, 1] int32
        one_hot = (iota_k == idx).astype(jnp.float32)    # [TN, Kp] (VMEM only)

        if needs_mask:
            # Rows >= n_valid are zero-padding added by the wrapper; zeroing
            # their one-hot makes q == x == 0 there, so counts and the SSE are
            # unaffected by the padding.
            row = (pl.program_id(0) * tile
                   + lax.broadcasted_iota(jnp.int32, (tile, 1), 0))
            one_hot = jnp.where(row < n_valid, one_hot, 0.0)

        # quantized = one_hot @ E (kept f32 so codebook values stay exact).
        # TODO(synk): for Kp >= ~2048 a true VMEM gather (jnp.take of the TN
        # selected rows) would beat this O(TN*Kp*D) f32 gather-matmul.
        q = jnp.dot(one_hot, e, preferred_element_type=jnp.float32)  # [TN, D]

        q_ref[...] = q.astype(q_ref.dtype)
        idx_ref[...] = idx.astype(jnp.int32)

        diff = q - x
        sse = jnp.sum(diff * diff)
        loss_ref[...] = jnp.full(loss_ref.shape, sse, loss_ref.dtype)
        cnt_ref[...] = jnp.sum(one_hot, axis=0).reshape(cnt_ref.shape)

    return kernel


def _choose_tile(n, want, per_row_bytes, budget_bytes):
    """Largest multiple-of-8 tile <= want that fits the VMEM budget; prefers
    at least 2 tiles so the parallel grid axis can split across TensorCores."""
    cap = min(int(want), max(8, int(budget_bytes) // max(int(per_row_bytes), 1)))
    half = (n // 2) // 8 * 8
    if half >= 8:
        cap = min(cap, half)
    return max(8, (cap // 8) * 8)


def vector_quantize(latents_nchw, embedding, beta=0.25, tile_n=None,
                    dist_matmul_dtype=jnp.bfloat16):
    """Forward pass of VectorQuantizer (use_ema=False).

    latents_nchw: [B, D, H, W] float32
    embedding   : [K, D] float32 codebook
    dist_matmul_dtype: dtype of the distance matmul. bf16 by default on ALL
        generations (v5e/v6e/v7x MXUs are bf16-native; f32 runs at a small
        fraction of peak).  Near-tie argmins may flip vs an f32 torch
        reference; pass jnp.float32 for bit-faithful encodings.  The one_hot@E
        product, counts and the loss are always exact f32.
    Returns (vq_loss, perplexity, quantized [B,D,H,W], one_hot [B*H*W, K]).
    """
    B, D, H, W = latents_nchw.shape
    K = embedding.shape[0]
    N = B * H * W
    Kp = ((K + 127) // 128) * 128          # lane-dense [*, K] tiles

    # NCHW -> NHWC -> [N, D]
    # TODO(synk): the NCHW<->NHWC transposes are extra HBM passes; folding them
    # into the kernel (channels on the sublane axis) would remove them. Kept in
    # f32 so the commitment loss sees exact latents.
    flat = jnp.transpose(latents_nchw, (0, 2, 3, 1)).reshape(N, D)
    flat = flat.astype(jnp.float32)

    # Codebook-derived constants hoisted out of the grid loop (computed once).
    # Only ONE copy of the codebook is shipped/resident (the old transposed
    # duplicate is gone); the dist matmul contracts against its D axis.
    e = embedding.astype(jnp.float32)
    e_pad = jnp.zeros((Kp, D), jnp.float32).at[:K, :].set(e)
    e2 = jnp.sum(e * e, axis=1)
    e2_pad = jnp.full((Kp,), 1e30, jnp.float32).at[:K].set(e2).reshape(1, Kp)

    # Generation-aware VMEM budget (v7x only has 64 MiB physical VMEM).
    try:
        vmem_cap = int(pltpu.get_tpu_info().vmem_capacity_bytes)
    except Exception:
        vmem_cap = 64 << 20                # conservative fallback (v7x-sized)
    vmem_budget = min(int(vmem_cap * 0.55), 96 << 20)
    if tile_n is None:
        tile_n = 2048 if vmem_cap >= (96 << 20) else 1024

    # Conservative per-row VMEM estimate: double-buffered x/q/idx blocks plus
    # the live [TN, Kp] f32 temporaries (dist / iota / where / one_hot).
    per_row_bytes = 4 * (6 * D + 7 * Kp)
    # Constant-index codebook operands: Pallas elides the re-fetch (their block
    # index never changes), only the double-buffer allocation is paid.
    # TODO(synk): pipeline_mode=pl.Buffered(1) on those specs would drop the
    # second buffer; omitted for portability across jax versions.
    codebook_bytes = 2 * 4 * (Kp * D + Kp)
    tile_budget = max(2 << 20, vmem_budget - codebook_bytes - (4 << 20))
    tile = _choose_tile(N, tile_n, per_row_bytes, tile_budget)

    # Pad N up to a whole number of tiles (no "tile must divide N" fallback)
    # and make nt even so the "parallel" grid axis splits evenly across v7x's
    # two TensorCores.  Padded rows are masked inside the kernel.
    nt = -(-N // tile)
    if nt % 2:
        nt += 1
    n_pad = nt * tile
    needs_mask = n_pad != N
    if needs_mask:
        flat = jnp.pad(flat, ((0, n_pad - N), (0, 0)))

    vmem_limit = int(min(vmem_budget,
                         max(32 << 20,
                             2 * tile * per_row_bytes + codebook_bytes + (2 << 20))))

    cost = pl.CostEstimate(
        flops=int(4 * n_pad * Kp * D),                    # xe + one_hot @ E
        transcendentals=0,
        bytes_accessed=int(4 * (2 * n_pad * D + Kp * D + Kp + n_pad
                                + nt * (128 + Kp))),
    )

    kernel = _make_vq_kernel(tile, N, needs_mask, dist_matmul_dtype)

    q_pad, idx_pad, loss_part, cnt_part = pl.pallas_call(
        kernel,
        out_shape=(
            jax.ShapeDtypeStruct((n_pad, D), jnp.float32),
            jax.ShapeDtypeStruct((n_pad, 1), jnp.int32),
            jax.ShapeDtypeStruct((nt, 1, 128), jnp.float32),
            jax.ShapeDtypeStruct((nt, 1, Kp), jnp.float32),
        ),
        grid_spec=pltpu.PrefetchScalarGridSpec(
            num_scalar_prefetch=0,
            grid=(nt,),
            in_specs=[
                pl.BlockSpec((tile, D), lambda i: (i, 0)),
                pl.BlockSpec((Kp, D), lambda i: (0, 0)),
                pl.BlockSpec((1, Kp), lambda i: (0, 0)),
            ],
            out_specs=[
                pl.BlockSpec((tile, D), lambda i: (i, 0)),
                pl.BlockSpec((tile, 1), lambda i: (i, 0)),
                pl.BlockSpec((1, 1, 128), lambda i: (i, 0, 0)),
                pl.BlockSpec((1, 1, Kp), lambda i: (i, 0, 0)),
            ],
        ),
        compiler_params=pltpu.CompilerParams(
            # Per-tile partial outputs (no cross-step accumulator) -> the grid
            # axis is truly parallel, so v7x can shard tiles across its 2 TCs.
            dimension_semantics=("parallel",),
            vmem_limit_bytes=vmem_limit),
        cost_estimate=cost,
    )(flat, e_pad, e2_pad)

    # Scalar epilogue in plain JAX; per-tile partials keep the f32 sums short.
    mse = jnp.sum(loss_part[:, 0, 0]) / (N * D)
    # commitment_loss * beta + embedding_loss (both equal `mse` numerically in
    # the forward pass; detach only changes gradients).
    vq_loss = mse * beta + mse

    counts = jnp.sum(cnt_part[:, 0, :K], axis=0)
    avg_probs = counts / N
    perplexity = jnp.exp(-jnp.sum(avg_probs * jnp.log(avg_probs + 1e-10)))

    # The kernel no longer writes an [N, Kp] f32 one-hot to HBM (that store was
    # the dominant HBM traffic); the module's one-hot output is rebuilt here at
    # [N, K] width from the per-row int32 indices.
    one_hot = jax.nn.one_hot(idx_pad[:N, 0], K, dtype=jnp.float32)

    # TODO(synk): straight-through / stop-gradient backward needs a custom_vjp;
    # the forward value of latents + (q - latents).detach() is exactly q.
    quantized_nchw = jnp.transpose(q_pad[:N].reshape(B, H, W, D), (0, 3, 1, 2))
    return vq_loss, perplexity, quantized_nchw, one_hot


if __name__ == "__main__":
    key = jax.random.PRNGKey(0)
    k_x, k_e = jax.random.split(key)

    B, D, H, W = 2, 4, 16, 16      # embedding_dim = 4
    K = 8                          # num_embeddings = 8

    x = jax.random.normal(k_x, (B, D, H, W), dtype=jnp.float32)
    # nn.Embedding init: uniform(-1/K, 1/K), deterministic via PRNGKey
    emb = jax.random.uniform(k_e, (K, D), dtype=jnp.float32,
                             minval=-1.0 / K, maxval=1.0 / K)

    vq_loss, perplexity, quantized, one_hot = vector_quantize(x, emb, beta=0.25)
    jax.block_until_ready((vq_loss, perplexity, quantized, one_hot))
    print("KERNEL_OK")
</pallas_src>

<mosaic_0001>
module attributes {stable_mosaic.version = 11 : i64} {
  func.func @kernel(%arg0: i32, %arg1: memref<256x4xf32, #tpu.memory_space<vmem>>, %arg2: memref<128x4xf32, #tpu.memory_space<vmem>>, %arg3: memref<1x128xf32, #tpu.memory_space<vmem>>, %arg4: memref<256x4xf32, #tpu.memory_space<vmem>>, %arg5: memref<256x1xi32, #tpu.memory_space<vmem>>, %arg6: memref<1x1x128xf32, #tpu.memory_space<vmem>>, %arg7: memref<1x1x128xf32, #tpu.memory_space<vmem>>) attributes {dimension_semantics = [#tpu.dimension_semantics<parallel>], iteration_bounds = array<i64: 2>, scalar_prefetch = 0 : i64, scratch_operands = 0 : i64, tpu.core_type = #tpu.core_type<tc>, window_params = [{transform_indices = @transform_0, window_bounds = array<i64: 256, 4>}, {pipeline_mode = #tpu.pipeline_mode<synchronous>, transform_indices = @transform_1, window_bounds = array<i64: 128, 4>}, {pipeline_mode = #tpu.pipeline_mode<synchronous>, transform_indices = @transform_2, window_bounds = array<i64: 1, 128>}, {transform_indices = @transform_3, window_bounds = array<i64: 256, 4>}, {transform_indices = @transform_4, window_bounds = array<i64: 256, 1>}, {transform_indices = @transform_5, window_bounds = array<i64: 1, 1, 128>}, {transform_indices = @transform_6, window_bounds = array<i64: 1, 1, 128>}]} {
    %c0 = arith.constant 0 : index
    %c0_0 = arith.constant 0 : index
    %0 = vector.load %arg1[%c0, %c0_0] : memref<256x4xf32, #tpu.memory_space<vmem>>, vector<256x4xf32>
    %c0_1 = arith.constant 0 : index
    %c0_2 = arith.constant 0 : index
    %1 = vector.load %arg2[%c0_1, %c0_2] : memref<128x4xf32, #tpu.memory_space<vmem>>, vector<128x4xf32>
    %c0_3 = arith.constant 0 : index
    %c0_4 = arith.constant 0 : index
    %2 = vector.load %arg3[%c0_3, %c0_4] : memref<1x128xf32, #tpu.memory_space<vmem>>, vector<1x128xf32>
    %cst = arith.constant -2.000000e+00 : f32
    %3 = vector.broadcast %cst : f32 to vector<256x4xf32>
    %4 = arith.mulf %0, %3 : vector<256x4xf32>
    %5 = arith.truncf %4 : vector<256x4xf32> to vector<256x4xbf16>
    %6 = arith.truncf %1 : vector<128x4xf32> to vector<128x4xbf16>
    %cst_5 = arith.constant dense<0.000000e+00> : vector<256x128xf32>
    %7 = tpu.matmul %5, %6, %cst_5 {dimension_numbers = #tpu.dot_dimension_numbers<[1], [1], [0], [0], [0, 0, 1, 0], [], []>} : vector<256x4xbf16>, vector<128x4xbf16>, vector<256x128xf32> -> vector<256x128xf32>
    %8 = vector.broadcast %2 : vector<1x128xf32> to vector<256x128xf32>
    %9 = arith.addf %7, %8 : vector<256x128xf32>
    %cst_6 = arith.constant dense<0x7F800000> : vector<256xf32>
    %10 = vector.multi_reduction <minimumf>, %9, %cst_6 [1] : vector<256x128xf32> to vector<256xf32>
    %11 = vector.shape_cast %10 : vector<256xf32> to vector<256x1xf32>
    %12 = tpu.iota {dimensions = array<i32: 1>} : vector<256x128xi32>
    %13 = vector.broadcast %11 : vector<256x1xf32> to vector<256x128xf32>
    %14 = arith.cmpf ole, %9, %13 : vector<256x128xf32>
    %c128_i32 = arith.constant 128 : i32
    %15 = vector.broadcast %c128_i32 : i32 to vector<256x128xi32>
    %16 = arith.select %14, %12, %15 : vector<256x128xi1>, vector<256x128xi32>
    %cst_7 = arith.constant dense<2147483647> : vector<256xi32>
    %17 = vector.multi_reduction <minsi>, %16, %cst_7 [1] : vector<256x128xi32> to vector<256xi32>
    %18 = vector.shape_cast %17 : vector<256xi32> to vector<256x1xi32>
    %19 = vector.broadcast %18 : vector<256x1xi32> to vector<256x128xi32>
    %20 = arith.cmpi eq, %12, %19 : vector<256x128xi32>
    %21 = arith.extui %20 : vector<256x128xi1> to vector<256x128xi32>
    %22 = arith.sitofp %21 : vector<256x128xi32> to vector<256x128xf32>
    %cst_8 = arith.constant dense<0.000000e+00> : vector<256x4xf32>
    %23 = tpu.matmul %22, %1, %cst_8 {dimension_numbers = #tpu.dot_dimension_numbers<[1], [0], [0], [1], [0, 0, 1, 1], [], []>} : vector<256x128xf32>, vector<128x4xf32>, vector<256x4xf32> -> vector<256x4xf32>
    %c0_9 = arith.constant 0 : index
    %c0_10 = arith.constant 0 : index
    %24 = vector.load %arg4[%c0_9, %c0_10] : memref<256x4xf32, #tpu.memory_space<vmem>>, vector<256x4xf32>
    tpu.vector_store %arg4[%c0_9, %c0_10], %23 {strides = array<i32>} : memref<256x4xf32, #tpu.memory_space<vmem>>, vector<256x4xf32>,
    %c0_11 = arith.constant 0 : index
    %c0_12 = arith.constant 0 : index
    %25 = vector.load %arg5[%c0_11, %c0_12] : memref<256x1xi32, #tpu.memory_space<vmem>>, vector<256x1xi32>
    tpu.vector_store %arg5[%c0_11, %c0_12], %18 {strides = array<i32>} : memref<256x1xi32, #tpu.memory_space<vmem>>, vector<256x1xi32>,
    %26 = arith.subf %23, %0 : vector<256x4xf32>
    %27 = arith.mulf %26, %26 : vector<256x4xf32>
    %28 = vector.shape_cast %27 : vector<256x4xf32> to vector<1x256x4xf32>
    %cst_13 = arith.constant dense<0.000000e+00> : vector<1xf32>
    %29 = vector.multi_reduction <add>, %28, %cst_13 [1, 2] : vector<1x256x4xf32> to vector<1xf32>
    %30 = vector.shape_cast %29 : vector<1xf32> to vector<1x1x1xf32>
    %31 = vector.extract %30[0, 0, 0] : f32 from vector<1x1x1xf32>
    %32 = vector.broadcast %31 : f32 to vector<1x1x128xf32>
    %c0_14 = arith.constant 0 : index
    %c0_15 = arith.constant 0 : index
    %c0_16 = arith.constant 0 : index
    %33 = vector.load %arg6[%c0_14, %c0_15, %c0_16] : memref<1x1x128xf32, #tpu.memory_space<vmem>>, vector<1x1x128xf32>
    tpu.vector_store %arg6[%c0_14, %c0_15, %c0_16], %32 {strides = array<i32>} : memref<1x1x128xf32, #tpu.memory_space<vmem>>, vector<1x1x128xf32>,
    %cst_17 = arith.constant dense<0.000000e+00> : vector<128xf32>
    %34 = vector.multi_reduction <add>, %22, %cst_17 [0] : vector<256x128xf32> to vector<128xf32>
    %35 = vector.shape_cast %34 : vector<128xf32> to vector<1x1x128xf32>
    %c0_18 = arith.constant 0 : index
    %c0_19 = arith.constant 0 : index
    %c0_20 = arith.constant 0 : index
    %36 = vector.load %arg7[%c0_18, %c0_19, %c0_20] : memref<1x1x128xf32, #tpu.memory_space<vmem>>, vector<1x1x128xf32>
    tpu.vector_store %arg7[%c0_18, %c0_19, %c0_20], %35 {strides = array<i32>} : memref<1x1x128xf32, #tpu.memory_space<vmem>>, vector<1x1x128xf32>,
    return
  }
  func.func @transform_0(%arg0: i32) -> (i32, i32) {
    %c0_i32 = arith.constant 0 : i32
    %c0_i32_0 = arith.constant 0 : i32
    return %arg0, %c0_i32 : i32, i32
  }
  func.func @transform_1(%arg0: i32) -> (i32, i32) {
    %c0_i32 = arith.constant 0 : i32
    %c0_i32_0 = arith.constant 0 : i32
    %c0_i32_1 = arith.constant 0 : i32
    return %c0_i32, %c0_i32_0 : i32, i32
  }
  func.func @transform_2(%arg0: i32) -> (i32, i32) {
    %c0_i32 = arith.constant 0 : i32
    %c0_i32_0 = arith.constant 0 : i32
    %c0_i32_1 = arith.constant 0 : i32
    return %c0_i32, %c0_i32_0 : i32, i32
  }
  func.func @transform_3(%arg0: i32) -> (i32, i32) {
    %c0_i32 = arith.constant 0 : i32
    %c0_i32_0 = arith.constant 0 : i32
    return %arg0, %c0_i32 : i32, i32
  }
  func.func @transform_4(%arg0: i32) -> (i32, i32) {
    %c0_i32 = arith.constant 0 : i32
    %c0_i32_0 = arith.constant 0 : i32
    return %arg0, %c0_i32 : i32, i32
  }
  func.func @transform_5(%arg0: i32) -> (i32, i32, i32) {
    %c0_i32 = arith.constant 0 : i32
    %c0_i32_0 = arith.constant 0 : i32
    %c0_i32_1 = arith.constant 0 : i32
    return %arg0, %c0_i32, %c0_i32_0 : i32, i32, i32
  }
  func.func @transform_6(%arg0: i32) -> (i32, i32, i32) {
    %c0_i32 = arith.constant 0 : i32
    %c0_i32_0 = arith.constant 0 : i32
    %c0_i32_1 = arith.constant 0 : i32
    return %arg0, %c0_i32, %c0_i32_0 : i32, i32, i32
  }
}

</mosaic_0001>

<bundles_post_ra>
// kernel: tpu_custom_call.1
= control target key start
LH: loop header
LB: loop body
LE: loop exit
PB: predicated region body
PF: predicated region fallthrough
CT: control target
= control target key end

     0   :  { %12 = vsyncpa [#allocation3], 0  ;;  %s3379_s0 = inlined_call_operand.vmem [shape: f32[512,4], index: 0, kind: input, shape index: {}]   ;;  %s3380_s1 = inlined_call_operand.vmem [shape: f32[128,4], index: 1, kind: input, shape index: {}]   ;;  %s3381_s2 = inlined_call_operand.vmem [shape: f32[1,128], index: 2, kind: input, shape index: {}]   ;;  %s3382_s3 = inlined_call_operand.vmem [shape: f32[512,4], index: 3, kind: output, shape index: {0}]   ;;  %s3383_s4 = inlined_call_operand.vmem [shape: s32[512,1], index: 4, kind: output, shape index: {1}]   ;;  %s3384_s5 = inlined_call_operand.hbm [shape: f32[2,1,128], index: 5, kind: output, shape index: {2}]   ;;  %s3385_s6 = inlined_call_operand.hbm [shape: f32[2,1,128], index: 6, kind: output, shape index: {3}]  }
   0x1   :  { %14 = vsyncpa [#allocation3 + $0x1], 0 }
   0x2   :  { %15 = vsyncpa [#allocation5], 0 }
   0x3   :  { %17 = vsyncpa [#allocation5 + $0x1], 0  ;;  %s2096_s21 = smov 0   ;;  %s2098_s22 = smov 0  }
   0x4   :  { %s2100_s23 = smov 0   ;;  %s2102_s24 = smov 0  }
   0x5 LB: > { %s2117_s25 = sadd.s32 4294967295, %s2057_s24   ;;  %s1766_s26 = sadd.s32 4294967294, %s2057_s24   ;;  %s2057_s24 = sphi %s2102_s24, %s3391_s24   ;;  %s2053_s23 = sphi %s2100_s23, %s3390_s23   ;;  %s2049_s22 = sphi %s2098_s22, %s3389_s22   ;;  %s2045_s21 = sphi %s2096_s21, %s3388_s21  }
   0x6   : > { %s2121_s27 = sadd.s32 1, %s2057_s24   ;;  %s150_s28 = sadd.s32 1, %s2053_s23 }
   0x7   : > { %s147_s29 = ssub.s32 %s2057_s24, %s2121_s27  ;;  %p160_p0 = scmp.ne.s32.totalorder %s2053_s23, %s2049_s22 }
   0x8   : > { %p148_p1 = scmp.eq.s32.totalorder %s147_s29, 0  ;;  %p161_p2 = scmp.eq.s32.totalorder %s2117_s25, 1 }
   0x9   : > { %p166_p3 = scmp.ne.s32.totalorder %s2049_s22, %s2045_s21  ;;  %p167_p4 = scmp.eq.s32.totalorder %s1766_s26, 1 }
   0xa   : > { %s2132_s30 = scalar_select %p148_p1, %s2053_s23, %s150_s28  }
   0xb   : > { %p2134_p5 = por %p161_p2, %p160_p0  ;;  %p2138_p6 = por %p167_p4, %p166_p3 }
   0xc   : > { %p1769_p7 = scmp.ge.s32.totalorder %s2057_s24, 1  ;;  %p226_p8 = scmp.lt.s32.totalorder %s2057_s24, 3 }
   0xe   : > { %p227_p9 = pnand %p1769_p7, %p226_p8 }
   0xf   : > { %s1770_s11 = sshll.u32 (!%p227_p9), %s2117_s25, 5  ;;  %s3264_s9 = sand.u32 (!%p227_p9), 1, %s2049_s22  }
  0x10   : > { %230 = sbr.rel (%p227_p9) target bundleno = 1211 (0x4bb), region = 32  ;;  %p270_p10 = scmp.lt.s32.totalorder (!%p227_p9), %s1770_s11, 63 }
  0x11   : > { %s268_s10 = scalar_lea.vmem (!%p227_p9), [#allocation4], %s3264_s9  ;;  %s1629_s13 = scalar_lea.hbm (!%p227_p9), %s3385_s6, %s2117_s25 }
  0x12   : > { %s1631_s14 = sshll.u32 (!%p227_p9), %s268_s10, 4  ;;  %s1633_s16 = sshll.u32 (!%p227_p9), %s1629_s13, 4  ;;  %s1632_s14 = int_to_ptr.vmem [resolvable:$true] %s1631_s14  ;;  %s1634_s16 = int_to_ptr.hbm [resolvable:$true] %s1633_s16 }
  0x13   : > { %s1600_s17 = scalar_lea.sflag (!%p227_p9), [#allocation5], %s3264_s9  ;;  %s1983_s26 = scalar_lea.hbm (!%p227_p9), %s3385_s6, 2 }
  0x15   : > { %v333_v0 = vld [vmem:[%s3380_s1 + $0x70] sm:$0xff]  ;;  %v334_v1 = vld [vmem:[%s3380_s1 + $0x78] sm:$0xff]  ;;  %vm395_vm0 = vcmask 31744   ;;  %v331_v3 = vld [vmem:[%s3380_s1 + $0x60] sm:$0xff]  ;;  %s3393_s11 = smov (!%p270_p10, %s1770_s11), 63 }
  0x16   : > { %v391_v2 = vpack.c.bf16 %v334_v1, %v333_v0  ;;  %1231 = vmatpush.msra.mxu1 %v334_v1  ;;  %1866 = vmatpush.msra.mxu3 %v334_v1  ;;  %v332_v4 = vld [vmem:[%s3380_s1 + $0x68] sm:$0xff]  ;;  %v330_v7 = vld [vmem:[%s3380_s1 + $0x58] sm:$0xff]  ;;  %v329_v9 = vld [vmem:[%s3380_s1 + $0x50] sm:$0xff]  ;;  %s2200_s12 = sshll.u32 %s3393_s11, 3 }
  0x17   : > { %v390_v6 = vpack.c.bf16 %v332_v4, %v331_v3  ;;  %v328_v10 = vld [vmem:[%s3380_s1 + $0x48] sm:$0xff]  ;;  %v389_v11 = vpack.c.bf16 %v330_v7, %v329_v9  ;;  %v327_v12 = vld [vmem:[%s3380_s1 + $0x40] sm:$0xff]  ;;  %v326_v13 = vld [vmem:[%s3380_s1 + $0x38] sm:$0xff]  ;;  %s2206_s15 = scalar_lea.vmem %s3379_s0, %s2200_s12  ;;  %s2724_s20 = scalar_lea.vmem %s3383_s4, %s2200_s12 }
  0x18   : > { %v466_v5 = vsel %vm395_vm0, %v391_v2, 0  ;;  %1232 = vmatpush.msra.mxu1 %v333_v0  ;;  %1867 = vmatpush.msra.mxu3 %v333_v0  ;;  %v325_v15 = vld [vmem:[%s3380_s1 + $0x30] sm:$0xff]  ;;  %v324_v16 = vld [vmem:[%s3380_s1 + $0x28] sm:$0xff]  ;;  %v388_v17 = vpack.c.bf16 %v328_v10, %v327_v12  ;;  %v323_v18 = vld [vmem:[%s3380_s1 + $0x20] sm:$0xff]  ;;  %s2962_s29 = scalar_lea.vmem %s3382_s3, %s2200_s12 }
  0x19   : > { %468 = vmatpush.bf16.xpose.msra.mxu0 %v466_v5  ;;  %1858 = vmatpush.bf16.xpose.msra.mxu2 %v466_v5  ;;  %v463_v8 = vsel %vm395_vm0, %v390_v6, 0  ;;  %v460_v14 = vsel %vm395_vm0, %v389_v11, 0  ;;  %v322_v19 = vld [vmem:[%s3380_s1 + $0x18] sm:$0xff]  ;;  %v321_v21 = vld [vmem:[%s3380_s1 + $0x10] sm:$0xff]  ;;  %v320_v22 = vld [vmem:[%s3380_s1 + $0x8] sm:$0xff]  ;;  %v387_v23 = vpack.c.bf16 %v326_v13, %v325_v15  ;;  %v386_v26 = vpack.c.bf16 %v324_v16, %v323_v18 }
  0x1a   : > { %1233 = vmatpush.msra.mxu1 %v332_v4  ;;  %1868 = vmatpush.msra.mxu3 %v332_v4  ;;  %v457_v20 = vsel %vm395_vm0, %v388_v17, 0  ;;  %v319_v24 = vld [vmem:[%s3380_s1] sm:$0xff]  ;;  %v385_v28 = vpack.c.bf16 %v322_v19, %v321_v21  ;;  %v288_v32 = vld [vmem:[%s2206_s15 + $0x8] sm:$0xff]  ;;  %v301_v33 = vld [vmem:[%s2206_s15 + $0x70] sm:$0xff] }
  0x1b   : > { %v454_v25 = vsel %vm395_vm0, %v387_v23, 0  ;;  %v451_v27 = vsel %vm395_vm0, %v386_v26, 0  ;;  %v384_v30 = vpack.c.bf16 %v320_v22, %v319_v24  ;;  %v287_v31 = vld [vmem:[%s2206_s15] sm:$0xff]  ;;  %v302_v34 = vld [vmem:[%s2206_s15 + $0x78] sm:$0xff]  ;;  %v337_v37 = vmul.f32 -2.0, %v288_v32  ;;  %v289_v42 = vld [vmem:[%s2206_s15 + $0x10] sm:$0xff] }
  0x1c   : > { %1234 = vmatpush.msra.mxu1 %v331_v3  ;;  %1869 = vmatpush.msra.mxu3 %v331_v3  ;;  %v448_v29 = vsel %vm395_vm0, %v385_v28, 0  ;;  %v336_v36 = vmul.f32 -2.0, %v287_v31  ;;  %v350_v38 = vmul.f32 -2.0, %v301_v33  ;;  %v351_v39 = vmul.f32 -2.0, %v302_v34  ;;  %v290_v43 = vld [vmem:[%s2206_s15 + $0x18] sm:$0xff]  ;;  %v303_v44 = vld [vmem:[%s2206_s15 + $0x80] sm:$0xff] }
  0x1d   : > { %v445_v35 = vsel %vm395_vm0, %v384_v30, 0  ;;  %v304_v45 = vld [vmem:[%s2206_s15 + $0x88] sm:$0xff]  ;;  %v338_v46 = vmul.f32 -2.0, %v289_v42  ;;  %v339_v47 = vmul.f32 -2.0, %v290_v43  ;;  %v352_v48 = vmul.f32 -2.0, %v303_v44  ;;  %v291_v52 = vld [vmem:[%s2206_s15 + $0x20] sm:$0xff] }
  0x1e   : > { %1235 = vmatpush.msra.mxu1 %v330_v7  ;;  %1870 = vmatpush.msra.mxu3 %v330_v7  ;;  %v368_v40 = vpack.c.bf16 %v337_v37, %v336_v36  ;;  %v375_v41 = vpack.c.bf16 %v351_v39, %v350_v38  ;;  %v353_v49 = vmul.f32 -2.0, %v304_v45  ;;  %v292_v53 = vld [vmem:[%s2206_s15 + $0x28] sm:$0xff]  ;;  %v305_v54 = vld [vmem:[%s2206_s15 + $0x90] sm:$0xff]  ;;  %v306_v55 = vld [vmem:[%s2206_s15 + $0x98] sm:$0xff]  ;;  %v340_v56 = vmul.f32 -2.0, %v291_v52 }
  0x1f   : > { %v369_v50 = vpack.c.bf16 %v339_v47, %v338_v46  ;;  %v341_v57 = vmul.f32 -2.0, %v292_v53  ;;  %v354_v58 = vmul.f32 -2.0, %v305_v54  ;;  %v355_v59 = vmul.f32 -2.0, %v306_v55  ;;  %v293_v62 = vld [vmem:[%s2206_s15 + $0x30] sm:$0xff]  ;;  %v294_v63 = vld [vmem:[%s2206_s15 + $0x38] sm:$0xff]  ;;  %v307_v0 = vld [vmem:[%s2206_s15 + $0xa0] sm:$0xff] }
  0x20   : > { %1236 = vmatpush.msra.mxu1 %v329_v9  ;;  %1871 = vmatpush.msra.mxu3 %v329_v9  ;;  %v376_v51 = vpack.c.bf16 %v353_v49, %v352_v48  ;;  %v308_v1 = vld [vmem:[%s2206_s15 + $0xa8] sm:$0xff]  ;;  %v342_v2 = vmul.f32 -2.0, %v293_v62  ;;  %v343_v3 = vmul.f32 -2.0, %v294_v63  ;;  %v356_v4 = vmul.f32 -2.0, %v307_v0  ;;  %v310_v11 = vld [vmem:[%s2206_s15 + $0xb8] sm:$0xff]  ;;  %v299_v28 = vld [vmem:[%s2206_s15 + $0x60] sm:$0xff] }
  0x21   : > { %469 = vmatpush.bf16.xpose.msra.mxu0 %v463_v8  ;;  %1859 = vmatpush.bf16.xpose.msra.mxu2 %v463_v8  ;;  %v370_v60 = vpack.c.bf16 %v341_v57, %v340_v56  ;;  %v377_v61 = vpack.c.bf16 %v355_v59, %v354_v58  ;;  %v357_v5 = vmul.f32 -2.0, %v308_v1  ;;  %v295_v8 = vld [vmem:[%s2206_s15 + $0x40] sm:$0xff]  ;;  %v296_v9 = vld [vmem:[%s2206_s15 + $0x48] sm:$0xff]  ;;  %v313_v30 = vld [vmem:[%s2206_s15 + $0xd0] sm:$0xff]  ;;  %v348_v32 = vmul.f32 -2.0, %v299_v28 }
  0x22   : > { %1237 = vmatpush.msra.mxu1 %v328_v10  ;;  %1872 = vmatpush.msra.mxu3 %v328_v10  ;;  %v371_v6 = vpack.c.bf16 %v343_v3, %v342_v2  ;;  %v309_v10 = vld [vmem:[%s2206_s15 + $0xb0] sm:$0xff]  ;;  %v314_v31 = vld [vmem:[%s2206_s15 + $0xd8] sm:$0xff]  ;;  %v362_v34 = vmul.f32 -2.0, %v313_v30  ;;  %v315_v38 = vld [vmem:[%s2206_s15 + $0xe0] sm:$0xff] }
  0x23   : > { %v378_v7 = vpack.c.bf16 %v357_v5, %v356_v4  ;;  %v316_v39 = vld [vmem:[%s2206_s15 + $0xe8] sm:$0xff]  ;;  %v2257_v43 = vld [vmem:[%s3381_s2] ss:$0 sm:$0xff] }
  0x24   : > { %1238 = vmatpush.msra.mxu1 %v327_v12  ;;  %1873 = vmatpush.msra.mxu3 %v327_v12  ;;  %v344_v12 = vmul.f32 -2.0, %v295_v8 }
  0x26   : > { %1239 = vmatpush.msra.mxu1 %v326_v13  ;;  %1874 = vmatpush.msra.mxu3 %v326_v13  ;;  %v345_v13 = vmul.f32 -2.0, %v296_v9 }
  0x28   : > { %1240 = vmatpush.msra.mxu1 %v325_v15  ;;  %1875 = vmatpush.msra.mxu3 %v325_v15  ;;  %v359_v15 = vmul.f32 -2.0, %v310_v11 }
  0x29   : > { %470 = vmatpush.bf16.xpose.msra.mxu0 %v460_v14  ;;  %1860 = vmatpush.bf16.xpose.msra.mxu2 %v460_v14  ;;  %v358_v14 = vmul.f32 -2.0, %v309_v10 }
  0x2a   : > { %1241 = vmatpush.msra.mxu1 %v324_v16  ;;  %1876 = vmatpush.msra.mxu3 %v324_v16  ;;  %v372_v16 = vpack.c.bf16 %v345_v13, %v344_v12 }
  0x2b   : > { %v379_v17 = vpack.c.bf16 %v359_v15, %v358_v14 }
  0x2c   : > { %1242 = vmatpush.msra.mxu1 %v323_v18  ;;  %1877 = vmatpush.msra.mxu3 %v323_v18  ;;  %v297_v18 = vld [vmem:[%s2206_s15 + $0x50] sm:$0xff] }
  0x2e   : > { %1243 = vmatpush.msra.mxu1 %v322_v19  ;;  %1878 = vmatpush.msra.mxu3 %v322_v19  ;;  %v298_v19 = vld [vmem:[%s2206_s15 + $0x58] sm:$0xff] }
  0x2f   : > { %v347_v23 = vmul.f32 -2.0, %v298_v19 }
  0x30   : > { %1244 = vmatpush.msra.mxu1 %v321_v21  ;;  %1879 = vmatpush.msra.mxu3 %v321_v21  ;;  %v312_v21 = vld [vmem:[%s2206_s15 + $0xc8] sm:$0xff] }
  0x31   : > { %471 = vmatpush.bf16.xpose.msra.mxu0 %v457_v20  ;;  %1861 = vmatpush.bf16.xpose.msra.mxu2 %v457_v20  ;;  %v311_v20 = vld [vmem:[%s2206_s15 + $0xc0] sm:$0xff] }
  0x32   : > { %1245 = vmatpush.msra.mxu1 %v320_v22  ;;  %1880 = vmatpush.msra.mxu3 %v320_v22  ;;  %v346_v22 = vmul.f32 -2.0, %v297_v18 }
  0x34   : > { %1246 = vmatpush.msra.mxu1 %v319_v24  ;;  %1881 = vmatpush.msra.mxu3 %v319_v24  ;;  %v360_v24 = vmul.f32 -2.0, %v311_v20  ;;  %v373_v26 = vpack.c.bf16 %v347_v23, %v346_v22 }
  0x39   : > { %472 = vmatpush.bf16.xpose.msra.mxu0 %v454_v25  ;;  %1862 = vmatpush.bf16.xpose.msra.mxu2 %v454_v25  ;;  %v361_v25 = vmul.f32 -2.0, %v312_v21 }
  0x41   : > { %473 = vmatpush.bf16.xpose.msra.mxu0 %v451_v27  ;;  %1863 = vmatpush.bf16.xpose.msra.mxu2 %v451_v27  ;;  %v380_v27 = vpack.c.bf16 %v361_v25, %v360_v24 }
  0x49   : > { %474 = vmatpush.bf16.xpose.msra.mxu0 %v448_v29  ;;  %1864 = vmatpush.bf16.xpose.msra.mxu2 %v448_v29  ;;  %v300_v29 = vld [vmem:[%s2206_s15 + $0x68] sm:$0xff] }
  0x4a   : > { %v349_v33 = vmul.f32 -2.0, %v300_v29 }
  0x4c   : > { %v374_v36 = vpack.c.bf16 %v349_v33, %v348_v32 }
  0x51   : > { %475 = vmatpush.bf16.xpose.msra.mxu0 %v445_v35  ;;  %1865 = vmatpush.bf16.xpose.msra.mxu2 %v445_v35  ;;  %v363_v35 = vmul.f32 -2.0, %v314_v31 }
  0x53   : > { %v381_v37 = vpack.c.bf16 %v363_v35, %v362_v34  ;;  %v621_v35 = vlaneseq }
  0x58   : > { %1776 = vmatmul.msk.bf16.vlgmr.msra.gmra.mxu0 %vm395_vm0, %v368_v40  ;;  %1783 = vmatmul.msk.bf16.vlgmr.msra.gmra.mxu2 %vm395_vm0, %v375_v41  ;;  %v364_v40 = vmul.f32 -2.0, %v315_v38  ;;  %v365_v41 = vmul.f32 -2.0, %v316_v39 }
  0x5a   : > { %v382_v42 = vpack.c.bf16 %v365_v41, %v364_v40 }
  0x68   : > { %1777 = vmatmul.msk.bf16.gmra.mxu0 %vm395_vm0, %v369_v50  ;;  %1784 = vmatmul.msk.bf16.gmra.mxu2 %vm395_vm0, %v376_v51 }
  0x78   : > { %1778 = vmatmul.msk.bf16.gmra.mxu0 %vm395_vm0, %v370_v60  ;;  %1785 = vmatmul.msk.bf16.gmra.mxu2 %vm395_vm0, %v377_v61 }
  0x88   : > { %1779 = vmatmul.msk.bf16.gmra.mxu0 %vm395_vm0, %v371_v6  ;;  %1786 = vmatmul.msk.bf16.gmra.mxu2 %vm395_vm0, %v378_v7 }
  0x98   : > { %1780 = vmatmul.msk.bf16.gmra.mxu0 %vm395_vm0, %v372_v16  ;;  %1787 = vmatmul.msk.bf16.gmra.mxu2 %vm395_vm0, %v379_v17 }
  0xa8   : > { %1781 = vmatmul.msk.bf16.gmra.mxu0 %vm395_vm0, %v373_v26  ;;  %1788 = vmatmul.msk.bf16.gmra.mxu2 %vm395_vm0, %v380_v27 }
  0xb8   : > { %1782 = vmatmul.msk.bf16.gmra.mxu0 %vm395_vm0, %v374_v36  ;;  %1789 = vmatmul.msk.bf16.gmra.mxu2 %vm395_vm0, %v381_v37  ;;  %v2369_v36 = vand.u32 127, %v621_v35 }
  0xc8   : > { %1790 = vmatmul.msk.bf16.gmra.mxu2 %vm395_vm0, %v382_v42 }
  0xd5   : > { %v477_v44 = vpop.f32.mrf.mxu0 }
  0xd6   : > { %v2260_v45 = vadd.f32 %v2257_v43, %v477_v44 }
  0xd8   : > { %557 = vmin.xlane.f32.xlu0 %v2260_v45 }
  0xdb   : > { %v512_v46 = vpop.f32.mrf.mxu2 }
  0xdc   : > { %v2264_v47 = vadd.f32 %v2257_v43, %v512_v46  ;;  %v317_v46 = vld [vmem:[%s2206_s15 + $0xf0] sm:$0xff] }
  0xdd   : > { %v479_v48 = vpop.f32.mrf.mxu0 }
  0xde   : > { %v2271_v52 = vadd.f32 %v2257_v43, %v479_v48  ;;  %v318_v48 = vld [vmem:[%s2206_s15 + $0xf8] sm:$0xff] }
  0xe0   : > { %585 = vmin.xlane.f32.xlu0 %v2264_v47 }
  0xe3   : > { %v514_v49 = vpop.f32.mrf.mxu2 }
  0xe4   : > { %v2268_v50 = vadd.f32 %v2257_v43, %v514_v49  ;;  %v366_v49 = vmul.f32 -2.0, %v317_v46 }
  0xe5   : > { %v482_v51 = vpop.f32.mrf.mxu0 }
  0xe6   : > { %v2274_v53 = vadd.f32 %v2257_v43, %v482_v51  ;;  %587 = vmin.xlane.f32.xlu2 %v2268_v50  ;;  %v367_v51 = vmul.f32 -2.0, %v318_v48 }
  0xe8   : > { %561 = vmin.xlane.f32.xlu1 %v2274_v53  ;;  %559 = vmin.xlane.f32.xlu0 %v2271_v52 }
  0xeb   : > { %v517_v54 = vpop.f32.mrf.mxu2 }
  0xec   : > { %v2280_v55 = vadd.f32 %v2257_v43, %v517_v54  ;;  %v383_v54 = vpack.c.bf16 %v367_v51, %v366_v49 }
  0xed   : > { %v484_v56 = vpop.f32.mrf.mxu0 }
  0xee   : > { %v2286_v59 = vadd.f32 %v2257_v43, %v484_v56  ;;  %1791 = vmatmul.msk.bf16.gmra.mxu2 %vm395_vm0, %v383_v54 }
  0xf0   : > { %589 = vmin.xlane.f32.xlu1 %v2280_v55 }
  0xf3   : > { %v2283_v57 = vpop.f32.mrf.mxu2 }
  0xf5   : > { %v487_v58 = vpop.f32.mrf.mxu0 }
  0xf6   : > { %v2289_v60 = vadd.f32 %v2257_v43, %v487_v58 }
  0xf8   : > { %565 = vmin.xlane.f32.xlu2 %v2289_v60  ;;  %563 = vmin.xlane.f32.xlu1 %v2286_v59 }
  0xfb   : > { %v522_v61 = vpop.f32.mrf.mxu2 }
  0xfc   : > { %v2294_v62 = vadd.f32 %v2257_v43, %v522_v61 }
  0xfd   : > { %v489_v63 = vpop.f32.mrf.mxu0 }
  0xfe   : > { %v2298_v2 = vadd.f32 %v2257_v43, %v489_v63 }
 0x100   : > { %593 = vmin.xlane.f32.xlu2 %v2294_v62 }
 0x103   : > { %v524_v0 = vpop.f32.mrf.mxu2 }
 0x104   : > { %v2306_v6 = vadd.f32 %v2257_v43, %v524_v0 }
 0x105   : > { %v492_v1 = vpop.f32.mrf.mxu0 }
 0x106   : > { %v2301_v3 = vadd.f32 %v2257_v43, %v492_v1 }
 0x108   : > { %567 = vmin.xlane.f32.xlu2 %v2298_v2  ;;  %569 = vmin.xlane.f32.xlu1 %v2301_v3 }
 0x10b   : > { %v527_v4 = vpop.f32.mrf.mxu2 }
 0x10c   : > { %v2314_v9 = vadd.f32 %v2257_v43, %v527_v4 }
 0x10d   : > { %v494_v5 = vpop.f32.mrf.mxu0 }
 0x10e   : > { %v2309_v7 = vadd.f32 %v2257_v43, %v494_v5 }
 0x110   : > { %595 = vmin.xlane.f32.xlu2 %v2306_v6  ;;  %571 = vmin.xlane.f32.xlu1 %v2309_v7 }
 0x113   : > { %v529_v8 = vpop.f32.mrf.mxu2 }
 0x114   : > { %v2322_v13 = vadd.f32 %v2257_v43, %v529_v8 }
 0x115   : > { %v497_v10 = vpop.f32.mrf.mxu0 }
 0x116   : > { %v2317_v11 = vadd.f32 %v2257_v43, %v497_v10 }
 0x118   : > { %597 = vmin.xlane.f32.xlu2 %v2314_v9  ;;  %573 = vmin.xlane.f32.xlu1 %v2317_v11 }
 0x11b   : > { %v532_v12 = vpop.f32.mrf.mxu2 }
 0x11c   : > { %v2330_v17 = vadd.f32 %v2257_v43, %v532_v12 }
 0x11d   : > { %v499_v14 = vpop.f32.mrf.mxu0 }
 0x11e   : > { %v2325_v15 = vadd.f32 %v2257_v43, %v499_v14 }
 0x120   : > { %599 = vmin.xlane.f32.xlu2 %v2322_v13  ;;  %575 = vmin.xlane.f32.xlu1 %v2325_v15 }
 0x123   : > { %v534_v16 = vpop.f32.mrf.mxu2 }
 0x124   : > { %v2333_v18 = vadd.f32 %v2257_v43, %v534_v16 }
 0x125   : > { %v502_v19 = vpop.f32.mrf.mxu0 }
 0x126   : > { %v2336_v20 = vadd.f32 %v2257_v43, %v502_v19  ;;  %603 = vmin.xlane.f32.xlu0 %v2333_v18 }
 0x128   : > { %601 = vmin.xlane.f32.xlu2 %v2330_v17  ;;  %577 = vmin.xlane.f32.xlu1 %v2336_v20 }
 0x12b   : > { %v537_v21 = vpop.f32.mrf.mxu2 }
 0x12c   : > { %v2342_v22 = vadd.f32 %v2257_v43, %v537_v21 }
 0x12d   : > { %v504_v23 = vpop.f32.mrf.mxu0 }
 0x12e   : > { %v2345_v24 = vadd.f32 %v2257_v43, %v504_v23 }
 0x130   : > { %605 = vmin.xlane.f32.xlu2 %v2342_v22  ;;  %579 = vmin.xlane.f32.xlu1 %v2345_v24 }
 0x133   : > { %v539_v25 = vpop.f32.mrf.mxu2 }
 0x134   : > { %v2350_v26 = vadd.f32 %v2257_v43, %v539_v25 }
 0x135   : > { %v507_v27 = vpop.f32.mrf.mxu0 }
 0x136   : > { %v2353_v28 = vadd.f32 %v2257_v43, %v507_v27 }
 0x138   : > { %581 = vmin.xlane.f32.xlu2 %v2353_v28  ;;  %607 = vmin.xlane.f32.xlu1 %v2350_v26 }
 0x13b   : > { %v542_v29 = vpop.f32.mrf.mxu2 }
 0x13c   : > { %v2358_v30 = vadd.f32 %v2257_v43, %v542_v29 }
 0x13d   : > { %v509_v31 = vpop.f32.mrf.mxu0 }
 0x13e   : > { %v2361_v32 = vadd.f32 %v2257_v43, %v509_v31  ;;  %609 = vmin.xlane.f32.xlu0 %v2358_v30 }
 0x140   : > { %583 = vmin.xlane.f32.xlu1 %v2361_v32 }
 0x143   : > { %v544_v33 = vpop.f32.mrf.mxu2 }
 0x144   : > { %v2366_v34 = vadd.f32 %v2257_v43, %v544_v33 }
 0x146   : > { %611 = vmin.xlane.f32.xlu2 %v2366_v34 }
 0x14b   : > { %v547_v37 = vpop.f32.mrf.mxu2  ;;  %v558_v38 = vpop.xlane.xlu0 %557 }
 0x14c   : > { %v2372_v39 = vadd.f32 %v2257_v43, %v547_v37  ;;  %vm623_vm1 = vcmp.le.f32.partialorder %v2260_v45, %v558_v38 }
 0x14d   : > { %v2376_v40 = vsel %vm623_vm1, %v2369_v36, 128 }
 0x14e   : > { %613 = vmin.xlane.f32.xlu1 %v2372_v39  ;;  %v688_v41 = vshra.s32 %v2376_v40, 16 }
 0x150   : > { %v2380_v42 = vcvt.s32.f32 %v688_v41 }
 0x152   : > { %691 = vmin.xlane.f32.xlu0 %v2380_v42 }
 0x153   : > { %v2383_v44 = vpop.xlane.xlu0 %585 }
 0x159   : > { %v2400_v1 = vpop.xlane.xlu2 %587 }
 0x15b   : > { %v562_v45 = vpop.xlane.xlu1 %561  ;;  %v560_v56 = vpop.xlane.xlu0 %559 }
 0x15c   : > { %vm624_vm2 = vcmp.le.f32.partialorder %v2271_v52, %v560_v56  ;;  %vm625_vm3 = vcmp.le.f32.partialorder %v2274_v53, %v562_v45 }
 0x15d   : > { %v2390_v58 = vsel %vm624_vm2, %v2369_v36, 128  ;;  %v2397_v0 = vsel %vm625_vm3, %v2369_v36, 128 }
 0x15e   : > { %v702_v61 = vshra.s32 %v2390_v58, 16  ;;  %v716_v52 = vshra.s32 %v2397_v0, 16 }
 0x160   : > { %v2394_v63 = vcvt.s32.f32 %v702_v61  ;;  %v2405_v5 = vcvt.s32.f32 %v716_v52 }
 0x162   : > { %705 = vmin.xlane.f32.xlu0 %v2394_v63 }
 0x163   : > { %v2402_v4 = vpop.xlane.xlu1 %589 }
 0x16a   : > { %719 = vmin.xlane.f32.xlu0 %v2405_v5 }
 0x16b   : > { %v566_v53 = vpop.xlane.xlu2 %565  ;;  %v564_v8 = vpop.xlane.xlu1 %563 }
 0x16c   : > { %vm626_vm4 = vcmp.le.f32.partialorder %v2286_v59, %v564_v8  ;;  %vm627_vm5 = vcmp.le.f32.partialorder %v2289_v60, %v566_v53 }
 0x16d   : > { %v2410_v10 = vsel %vm626_vm4, %v2369_v36, 128  ;;  %v2417_v16 = vsel %vm627_vm5, %v2369_v36, 128 }
 0x16e   : > { %v730_v12 = vshra.s32 %v2410_v10, 16  ;;  %v744_v21 = vshra.s32 %v2417_v16, 16 }
 0x170   : > { %v2414_v14 = vcvt.s32.f32 %v730_v12  ;;  %v2428_v25 = vcvt.s32.f32 %v744_v21 }
 0x172   : > { %733 = vmin.xlane.f32.xlu0 %v2414_v14 }
 0x173   : > { %v594_v19 = vpop.xlane.xlu2 %593 }
 0x174   : > { %vm641_vm6 = vcmp.le.f32.partialorder %v2294_v62, %v594_v19 }
 0x175   : > { %v2423_v59 = vsel %vm641_vm6, %v2369_v36, 128 }
 0x176   : > { %v940_v23 = vshra.s32 %v2423_v59, 16 }
 0x178   : > { %v2426_v60 = vcvt.s32.f32 %v940_v23 }
 0x17a   : > { %943 = vmin.xlane.f32.xlu1 %v2426_v60  ;;  %747 = vmin.xlane.f32.xlu0 %v2428_v25 }
 0x17b   : > { %v568_v27 = vpop.xlane.xlu2 %567  ;;  %v570_v29 = vpop.xlane.xlu1 %569 }
 0x17c   : > { %vm628_vm7 = vcmp.le.f32.partialorder %v2298_v2, %v568_v27  ;;  %vm629_vm8 = vcmp.le.f32.partialorder %v2301_v3, %v570_v29 }
 0x17d   : > { %v2435_v62 = vsel %vm628_vm7, %v2369_v36, 128  ;;  %v2438_v31 = vsel %vm629_vm8, %v2369_v36, 128 }
 0x17e   : > { %v772_v33 = vshra.s32 %v2438_v31, 16  ;;  %v758_v35 = vshra.s32 %v2435_v62, 16 }
 0x180   : > { %v2442_v37 = vcvt.s32.f32 %v772_v33  ;;  %v2444_v38 = vcvt.s32.f32 %v758_v35 }
 0x182   : > { %775 = vmin.xlane.f32.xlu1 %v2442_v37  ;;  %761 = vmin.xlane.f32.xlu0 %v2444_v38 }
 0x183   : > { %v596_v2 = vpop.xlane.xlu2 %595  ;;  %v572_v3 = vpop.xlane.xlu1 %571 }
 0x184   : > { %vm642_vm9 = vcmp.le.f32.partialorder %v2306_v6, %v596_v2  ;;  %vm630_vm10 = vcmp.le.f32.partialorder %v2309_v7, %v572_v3 }
 0x185   : > { %v2450_v41 = vsel %vm642_vm9, %v2369_v36, 128  ;;  %v2457_v49 = vsel %vm630_vm10, %v2369_v36, 128 }
 0x186   : > { %v954_v46 = vshra.s32 %v2450_v41, 16  ;;  %v786_v6 = vshra.s32 %v2457_v49, 16 }
 0x188   : > { %v2454_v48 = vcvt.s32.f32 %v954_v46  ;;  %v2469_v61 = vcvt.s32.f32 %v786_v6 }
 0x18a   : > { %957 = vmin.xlane.f32.xlu0 %v2454_v48 }
 0x18b   : > { %v598_v51 = vpop.xlane.xlu2 %597  ;;  %v574_v54 = vpop.xlane.xlu1 %573 }
 0x18c   : > { %vm643_vm11 = vcmp.le.f32.partialorder %v2314_v9, %v598_v51  ;;  %vm631_vm12 = vcmp.le.f32.partialorder %v2317_v11, %v574_v54 }
 0x18d   : > { %v2463_v45 = vsel %vm643_vm11, %v2369_v36, 128  ;;  %v2472_v52 = vsel %vm631_vm12, %v2369_v36, 128 }
 0x18e   : > { %v968_v7 = vshra.s32 %v2463_v45, 16  ;;  %v800_v8 = vshra.s32 %v2472_v52, 16 }
 0x190   : > { %v2467_v56 = vcvt.s32.f32 %v968_v7  ;;  %v2485_v21 = vcvt.s32.f32 %v800_v8  ;;  %v687_v8 = vand.u32 65535, %v2376_v40  ;;  %v701_v40 = vand.u32 65535, %v2390_v58 }
 0x191   : > { %v2546_v58 = vadd.f32 %v2257_v43, %v2283_v57 }
 0x192   : > { %971 = vmin.xlane.f32.xlu2 %v2467_v56  ;;  %789 = vmin.xlane.f32.xlu0 %v2469_v61 }
 0x193   : > { %v600_v9 = vpop.xlane.xlu2 %599  ;;  %v576_v53 = vpop.xlane.xlu1 %575 }
 0x194   : > { %vm644_vm13 = vcmp.le.f32.partialorder %v2322_v13, %v600_v9  ;;  %vm632_vm14 = vcmp.le.f32.partialorder %v2325_v15, %v576_v53 }
 0x195   : > { %v2479_v11 = vsel %vm644_vm13, %v2369_v36, 128  ;;  %v2488_v23 = vsel %vm632_vm14, %v2369_v36, 128 }
 0x196   : > { %v982_v12 = vshra.s32 %v2479_v11, 16  ;;  %v814_v29 = vshra.s32 %v2488_v23, 16 }
 0x198   : > { %v2483_v19 = vcvt.s32.f32 %v982_v12  ;;  %v2499_v35 = vcvt.s32.f32 %v814_v29 }
 0x199   : > { %v604_v9 = vpop.xlane.xlu0 %603 }
 0x19a   : > { %985 = vmin.xlane.f32.xlu1 %v2483_v19  ;;  %803 = vmin.xlane.f32.xlu2 %v2485_v21  ;;  %vm646_vm6 = vcmp.le.f32.partialorder %v2333_v18, %v604_v9  ;;  %v729_v18 = vand.u32 65535, %v2410_v10  ;;  %v549_v9 = vpop.f32.mrf.mxu2 }
 0x19b   : > { %v602_v13 = vpop.xlane.xlu2 %601  ;;  %v578_v27 = vpop.xlane.xlu1 %577 }
 0x19c   : > { %vm645_vm15 = vcmp.le.f32.partialorder %v2330_v17, %v602_v13  ;;  %vm633_vm1 = vcmp.le.f32.partialorder %v2336_v20, %v578_v27 }
 0x19d   : > { %v2495_v15 = vsel %vm645_vm15, %v2369_v36, 128  ;;  %v2504_v3 = vsel %vm633_vm1, %v2369_v36, 128  ;;  %vm637_vm15 = vcmp.le.f32.partialorder %v2264_v47, %v2383_v44  ;;  %v785_v47 = vand.u32 65535, %v2457_v49 }
 0x19e   : > { %v996_v33 = vshra.s32 %v2495_v15, 16  ;;  %v828_v46 = vshra.s32 %v2504_v3, 16  ;;  %v771_v44 = vand.u32 65535, %v2438_v31 }
 0x1a0   : > { %v2501_v2 = vcvt.s32.f32 %v996_v33  ;;  %v2509_v51 = vcvt.s32.f32 %v828_v46 }
 0x1a2   : > { %817 = vmin.xlane.f32.xlu1 %v2499_v35  ;;  %999 = vmin.xlane.f32.xlu0 %v2501_v2 }
 0x1a3   : > { %v606_v17 = vpop.xlane.xlu2 %605  ;;  %v580_v12 = vpop.xlane.xlu1 %579 }
 0x1a4   : > { %vm634_vm3 = vcmp.le.f32.partialorder %v2345_v24, %v580_v12  ;;  %vm647_vm8 = vcmp.le.f32.partialorder %v2342_v22, %v606_v17  ;;  %v743_v22 = vand.u32 65535, %v2417_v16  ;;  %v939_v17 = vand.u32 65535, %v2423_v59 }
 0x1a5   : > { %v2529_v27 = vsel %vm634_vm3, %v2369_v36, 128  ;;  %v2569_v10 = vsel %vm647_vm8, %v2369_v36, 128 }
 0x1a6   : > { %v842_v33 = vshra.s32 %v2529_v27, 16 }
 0x1a8   : > { %v2532_v46 = vcvt.s32.f32 %v842_v33  ;;  %v2551_v33 = vsel %vm646_vm6, %v2369_v36, 128 }
 0x1aa   : > { %831 = vmin.xlane.f32.xlu0 %v2509_v51 }
 0x1ab   : > { %v582_v20 = vpop.xlane.xlu2 %581  ;;  %v608_v24 = vpop.xlane.xlu1 %607 }
 0x1ac   : > { %vm635_vm2 = vcmp.le.f32.partialorder %v2353_v28, %v582_v20  ;;  %v689_v28 = vcvt.s32.f32 %v687_v8  ;;  %v715_v8 = vand.u32 65535, %v2397_v0  ;;  %v1010_v0 = vshra.s32 %v2551_v33, 16 }
 0x1ad   : > { %v2514_v54 = vsel %vm635_vm2, %v2369_v36, 128  ;;  %vm648_vm13 = vcmp.le.f32.partialorder %v2350_v26, %v608_v24 }
 0x1ae   : > { %v856_v6 = vshra.s32 %v2514_v54, 16 }
 0x1b0   : > { %v2517_v7 = vcvt.s32.f32 %v856_v6  ;;  %v703_v6 = vcvt.s32.f32 %v701_v40 }
 0x1b1   : > { %v2520_v53 = vpop.xlane.xlu0 %609 }
 0x1b2   : > { %859 = vmin.xlane.f32.xlu1 %v2517_v7 }
 0x1b3   : > { %v584_v12 = vpop.xlane.xlu1 %583 }
 0x1b4   : > { %vm636_vm10 = vcmp.le.f32.partialorder %v2361_v32, %v584_v12  ;;  %v757_v32 = vand.u32 65535, %v2435_v62  ;;  %v953_v62 = vand.u32 65535, %v2450_v41  ;;  %v2618_v41 = vsel %vm637_vm15, %v2369_v36, 128 }
 0x1b5   : > { %v2586_v16 = vsel %vm636_vm10, %v2369_v36, 128  ;;  %vm639_vm10 = vcmp.le.f32.partialorder %v2280_v55, %v2402_v4  ;;  %v995_v55 = vand.u32 65535, %v2495_v15 }
 0x1b6   : > { %v870_v12 = vshra.s32 %v2586_v16, 16 }
 0x1c1   : > { %v2557_v40 = vpop.xlane.xlu1 %613 }
 0x1c5   : > { %v2524_v13 = vpop.xlane.xlu0 %691 }
 0x1c6   : > { %vm693_vm4 = vcmp.eq.f32.partialorder %v2380_v42, %v2524_v13 }
 0x1c7   : > { %v694_v29 = vsel %vm693_vm4, %v689_v28, inf  ;;  %vm638_vm4 = vcmp.le.f32.partialorder %v2268_v50, %v2400_v1 }
 0x1c8   : > { %695 = vmin.xlane.f32.xlu2 %v694_v29  ;;  %v717_v29 = vcvt.s32.f32 %v715_v8 }
 0x1d0   : > { %845 = vmin.xlane.f32.xlu2 %v2532_v46 }
 0x1d5   : > { %v2536_v20 = vpop.xlane.xlu0 %705 }
 0x1d6   : > { %vm707_vm5 = vcmp.eq.f32.partialorder %v2394_v63, %v2536_v20 }
 0x1d7   : > { %v708_v42 = vsel %vm707_vm5, %v703_v6, inf  ;;  %v731_v6 = vcvt.s32.f32 %v729_v18  ;;  %v941_v18 = vcvt.s32.f32 %v939_v17  ;;  %vm649_vm5 = vcmp.le.f32.partialorder %v2358_v30, %v2520_v53 }
 0x1d8   : > { %709 = vmin.xlane.f32.xlu0 %v708_v42  ;;  %v2564_v42 = vcvt.s32.f32 %v1010_v0  ;;  %v745_v0 = vcvt.s32.f32 %v743_v22  ;;  %v2601_v22 = vsel %vm648_vm13, %v2369_v36, 128 }
 0x1d9   : > { %v1038_v26 = vshra.s32 %v2601_v22, 16 }
 0x1dd   : > { %v2542_v28 = vpop.xlane.xlu0 %719 }
 0x1de   : > { %vm721_vm7 = vcmp.eq.f32.partialorder %v2405_v5, %v2542_v28  ;;  %v2562_v5 = vadd.f32 %v2257_v43, %v549_v9 }
 0x1df   : > { %v722_v63 = vsel %vm721_vm7, %v717_v29, inf  ;;  %v1024_v29 = vshra.s32 %v2569_v10, 16 }
 0x1e0   : > { %591 = vmin.xlane.f32.xlu0 %v2546_v58  ;;  %723 = vmin.xlane.f32.xlu2 %v722_v63 }
 0x1e1   : > { %v2588_v9 = vcvt.s32.f32 %v1024_v29  ;;  %v552_v29 = vpop.f32.mrf.mxu2 }
 0x1e2   : > { %v2609_v24 = vadd.f32 %v2257_v43, %v552_v29  ;;  %v773_v29 = vcvt.s32.f32 %v771_v44  ;;  %v2649_v44 = vsel %vm638_vm4, %v2369_v36, 128 }
 0x1e5   : > { %v2559_v57 = vpop.xlane.xlu0 %733 }
 0x1e6   : > { %vm735_vm9 = vcmp.eq.f32.partialorder %v2414_v14, %v2559_v57 }
 0x1e7   : > { %v736_v8 = vsel %vm735_vm9, %v731_v6, inf }
 0x1e8   : > { %615 = vmin.xlane.f32.xlu0 %v2562_v5  ;;  %1013 = vmin.xlane.f32.xlu2 %v2564_v42 }
 0x1e9   : > { %737 = vmin.xlane.f32.xlu1 %v736_v8  ;;  %v2596_v8 = vcvt.s32.f32 %v870_v12  ;;  %v884_v12 = vshra.s32 %v2618_v41, 16 }
 0x1ed   : > { %v2577_v63 = vpop.xlane.xlu1 %943  ;;  %v2579_v14 = vpop.xlane.xlu0 %747 }
 0x1ee   : > { %vm945_vm11 = vcmp.eq.f32.partialorder %v2426_v60, %v2577_v63  ;;  %vm749_vm12 = vcmp.eq.f32.partialorder %v2428_v25, %v2579_v14  ;;  %v759_v25 = vcvt.s32.f32 %v757_v32 }
 0x1ef   : > { %v946_v59 = vsel %vm945_vm11, %v941_v18, inf  ;;  %v750_v6 = vsel %vm749_vm12, %v745_v0, inf  ;;  %v612_v18 = vpop.xlane.xlu2 %611  ;;  %v955_v0 = vcvt.s32.f32 %v953_v62  ;;  %v2633_v62 = vcvt.s32.f32 %v884_v12 }
 0x1f0   : > { %947 = vmin.xlane.f32.xlu2 %v946_v59  ;;  %751 = vmin.xlane.f32.xlu0 %v750_v6  ;;  %v2613_v59 = vcvt.s32.f32 %v1038_v26  ;;  %v967_v26 = vand.u32 65535, %v2463_v45  ;;  %v2654_v45 = vsel %vm649_vm5, %v2369_v36, 128  ;;  %vm650_vm8 = vcmp.le.f32.partialorder %v2366_v34, %v612_v18 }
 0x1f1   : > { %1027 = vmin.xlane.f32.xlu1 %v2588_v9  ;;  %v1052_v53 = vshra.s32 %v2654_v45, 16  ;;  %v827_v34 = vand.u32 65535, %v2504_v3  ;;  %v813_v18 = vand.u32 65535, %v2488_v23  ;;  %v2695_v3 = vsel %vm639_vm10, %v2369_v36, 128 }
 0x1f2   : > { %v912_v4 = vshra.s32 %v2695_v3, 16 }
 0x1f5   : > { %v2594_v60 = vpop.xlane.xlu0 %761  ;;  %v2624_v32 = vpop.xlane.xlu1 %775 }
 0x1f6   : > { %vm763_vm14 = vcmp.eq.f32.partialorder %v2444_v38, %v2594_v60  ;;  %vm777_vm2 = vcmp.eq.f32.partialorder %v2442_v37, %v2624_v32  ;;  %v554_v37 = vpop.f32.mrf.mxu2 }
 0x1f7   : > { %v764_v17 = vsel %vm763_vm14, %v759_v25, inf  ;;  %v778_v31 = vsel %vm777_vm2, %v773_v29, inf  ;;  %v2657_v50 = vadd.f32 %v2257_v43, %v554_v37  ;;  %v2670_v43 = vcvt.s32.f32 %v1052_v53 }
 0x1f8   : > { %873 = vmin.xlane.f32.xlu0 %v2596_v8  ;;  %765 = vmin.xlane.f32.xlu2 %v764_v17  ;;  %v787_v17 = vcvt.s32.f32 %v785_v47  ;;  %v969_v47 = vcvt.s32.f32 %v967_v26  ;;  %v815_v37 = vcvt.s32.f32 %v813_v18  ;;  %vm651_vm14 = vcmp.le.f32.partialorder %v2372_v39, %v2557_v40 }
 0x1f9   : > { %v698_v53 = vcvt.f32.s32 %v2524_v13  ;;  %v841_v18 = vand.u32 65535, %v2529_v27  ;;  %v712_v27 = vcvt.f32.s32 %v2536_v20 }
 0x1fd   : > { %v2611_v38 = vpop.xlane.xlu0 %957 }
 0x1fe   : > { %vm959_vm1 = vcmp.eq.f32.partialorder %v2454_v48, %v2611_v38 }
 0x1ff   : > { %v960_v6 = vsel %vm959_vm1, %v955_v0, inf  ;;  %v799_v0 = vand.u32 65535, %v2472_v52  ;;  %vm1376_vm1 = vcmask 7168  }
 0x200   : > { %1041 = vmin.xlane.f32.xlu0 %v2613_v59  ;;  %617 = vmin.xlane.f32.xlu2 %v2609_v24 }
 0x201   : > { %961 = vmin.xlane.f32.xlu1 %v960_v6  ;;  %v801_v6 = vcvt.s32.f32 %v799_v0  ;;  %v829_v0 = vcvt.s32.f32 %v827_v34 }
 0x205   : > { %v2627_v25 = vpop.xlane.xlu2 %971  ;;  %v2629_v48 = vpop.xlane.xlu0 %789 }
 0x206   : > { %vm791_vm3 = vcmp.eq.f32.partialorder %v2469_v61, %v2629_v48  ;;  %vm973_vm6 = vcmp.eq.f32.partialorder %v2467_v56, %v2627_v25  ;;  %v981_v56 = vand.u32 65535, %v2479_v11 }
 0x207   : > { %v792_v49 = vsel %vm791_vm3, %v787_v17, inf  ;;  %v974_v1 = vsel %vm973_vm6, %v969_v47, inf }
 0x208   : > { %887 = vmin.xlane.f32.xlu2 %v2633_v62  ;;  %793 = vmin.xlane.f32.xlu0 %v792_v49  ;;  %v983_v17 = vcvt.s32.f32 %v981_v56  ;;  %v2675_v49 = vsel %vm650_vm8, %v2369_v36, 128 }
 0x209   : > { %779 = vmin.xlane.f32.xlu1 %v778_v31 }
 0x20d   : > { %v2646_v61 = vpop.xlane.xlu2 %803  ;;  %v2659_v52 = vpop.xlane.xlu1 %985 }
 0x20e   : > { %vm805_vm7 = vcmp.eq.f32.partialorder %v2485_v21, %v2646_v61  ;;  %v898_v21 = vshra.s32 %v2649_v44, 16  ;;  %vm987_vm9 = vcmp.eq.f32.partialorder %v2483_v19, %v2659_v52  ;;  %v1066_v19 = vshra.s32 %v2675_v49, 16 }
 0x20f   : > { %v806_v30 = vsel %vm805_vm7, %v801_v6, inf  ;;  %v988_v11 = vsel %vm987_vm9, %v983_v17, inf }
 0x210   : > { %807 = vmin.xlane.f32.xlu2 %v806_v30  ;;  %975 = vmin.xlane.f32.xlu0 %v974_v1  ;;  %v2672_v29 = vcvt.s32.f32 %v898_v21  ;;  %v2690_v6 = vcvt.s32.f32 %v1066_v19  ;;  %v2707_v1 = vsel %vm651_vm14, %v2369_v36, 128  ;;  %v843_v19 = vcvt.s32.f32 %v841_v18 }
 0x211   : > { %619 = vmin.xlane.f32.xlu1 %v2657_v50  ;;  %v1080_v15 = vshra.s32 %v2707_v1, 16 }
 0x213   : > { %v2711_v56 = vcvt.s32.f32 %v1080_v15 }
 0x215   : > { %v2666_v12 = vpop.xlane.xlu0 %999  ;;  %v2681_v31 = vpop.xlane.xlu1 %817 }
 0x216   : > { %vm819_vm11 = vcmp.eq.f32.partialorder %v2499_v35, %v2681_v31  ;;  %vm1001_vm13 = vcmp.eq.f32.partialorder %v2501_v2, %v2666_v12  ;;  %v997_v35 = vcvt.s32.f32 %v995_v55  ;;  %v855_v2 = vand.u32 65535, %v2514_v54 }
 0x217   : > { %v820_v47 = vsel %vm819_vm11, %v815_v37, inf }
 0x218   : > { %1055 = vmin.xlane.f32.xlu2 %v2670_v43  ;;  %901 = vmin.xlane.f32.xlu0 %v2672_v29  ;;  %v1002_v30 = vsel %vm1001_vm13, %v997_v35, inf  ;;  %v857_v40 = vcvt.s32.f32 %v855_v2  ;;  %v2060_v35 = vmov 0.0  }
 0x219   : > { %989 = vmin.xlane.f32.xlu1 %v988_v11  ;;  %v699_v11 = vshll.u32 %v698_v53, 16 }
 0x21d   : > { %v2686_v26 = vpop.xlane.xlu0 %831 }
 0x21e   : > { %vm833_vm12 = vcmp.eq.f32.partialorder %v2509_v51, %v2686_v26  ;;  %v2704_v51 = vcvt.s32.f32 %v912_v4  ;;  %v726_v4 = vcvt.f32.s32 %v2542_v28 }
 0x21f   : > { %v834_v23 = vsel %vm833_vm12, %v829_v0, inf }
 0x220   : > { %1069 = vmin.xlane.f32.xlu0 %v2690_v6  ;;  %835 = vmin.xlane.f32.xlu2 %v834_v23  ;;  %v713_v23 = vshll.u32 %v712_v27, 16 }
 0x221   : > { %821 = vmin.xlane.f32.xlu1 %v820_v47 }
 0x225   : > { %v2715_v39 = vpop.xlane.xlu1 %859 }
 0x226   : > { %vm861_vm15 = vcmp.eq.f32.partialorder %v2517_v7, %v2715_v39  ;;  %v2059_v7 = vmov 1.0  }
 0x227   : > { %v862_v21 = vsel %vm861_vm15, %v857_v40, inf  ;;  %v727_v40 = vshll.u32 %v726_v4, 16  ;;  %v1023_v4 = vand.u32 65535, %v2569_v10 }
 0x228   : > { %1003 = vmin.xlane.f32.xlu2 %v1002_v30 }
 0x229   : > { %915 = vmin.xlane.f32.xlu1 %v2704_v51 }
 0x231   : > { %1083 = vmin.xlane.f32.xlu1 %v2711_v56 }
 0x239   : > { %863 = vmin.xlane.f32.xlu1 %v862_v21 }
 0x23b   : > { %v696_v17 = vpop.xlane.xlu2 %695 }
 0x23c   : > { %v697_v34 = vcvt.f32.s32 %v696_v17 }
 0x23e   : > { %v700_v54 = vadd.s32 %v699_v11, %v697_v34  ;;  %v1009_v11 = vand.u32 65535, %v2551_v33 }
 0x240   : > { %1377 = vst.msk [vmem:[%s2724_s20] sm:$0xff] %vm1376_vm1, %v700_v54  ;;  %vm1135_vm2 = vcmp.eq.s32.totalorder %v2369_v36, %v700_v54  ;;  %v740_v54 = vcvt.f32.s32 %v2559_v57  ;;  %v1011_v33 = vcvt.s32.f32 %v1009_v11 }
 0x241   : > { %1824 = vmatmul.msk.f32.vlgmr.msra.gmra.mxu1 %vm1135_vm2, %v2059_v7 }
 0x243   : > { %v2733_v13 = vpop.xlane.xlu2 %845 }
 0x244   : > { %vm847_vm3 = vcmp.eq.f32.partialorder %v2532_v46, %v2733_v13  ;;  %v1792_v46 = vsel %vm1135_vm2, 1.0, %v2060_v35 }
 0x245   : > { %v848_v0 = vsel %vm847_vm3, %v843_v19, inf }
 0x246   : > { %849 = vmin.xlane.f32.xlu0 %v848_v0 }
 0x24b   : > { %v710_v37 = vpop.xlane.xlu0 %709 }
 0x24c   : > { %v711_v47 = vcvt.f32.s32 %v710_v37  ;;  %v741_v37 = vshll.u32 %v740_v54, 16 }
 0x24e   : > { %v714_v55 = vadd.s32 %v713_v23, %v711_v47 }
 0x250   : > { %1378 = vst.msk [vmem:[%s2724_s20 + $0x8] sm:$0xff] %vm1376_vm1, %v714_v55  ;;  %vm1136_vm4 = vcmp.eq.s32.totalorder %v2369_v36, %v714_v55 }
 0x251   : > { %v1793_v30 = vsel %vm1136_vm4, 1.0, %v2060_v35  ;;  %1825 = vmatmul.msk.f32.gmra.mxu1 %vm1136_vm4, %v2059_v7 }
 0x252   : > { %v1547_v20 = vadd.f32 %v1793_v30, %v1792_v46  ;;  %v950_v30 = vcvt.f32.s32 %v2577_v63 }
 0x253   : > { %v724_v15 = vpop.xlane.xlu2 %723  ;;  %v592_v2 = vpop.xlane.xlu0 %591 }
 0x254   : > { %v725_v53 = vcvt.f32.s32 %v724_v15  ;;  %vm640_vm5 = vcmp.le.f32.partialorder %v2546_v58, %v592_v2  ;;  %v951_v63 = vshll.u32 %v950_v30, 16 }
 0x255   : > { %v2749_v28 = vsel %vm640_vm5, %v2369_v36, 128 }
 0x256   : > { %v728_v21 = vadd.s32 %v727_v40, %v725_v53  ;;  %v926_v17 = vshra.s32 %v2749_v28, 16  ;;  %v1025_v40 = vcvt.s32.f32 %v1023_v4  ;;  %v1037_v4 = vand.u32 65535, %v2601_v22 }
 0x258   : > { %1379 = vst.msk [vmem:[%s2724_s20 + $0x10] sm:$0xff] %vm1376_vm1, %v728_v21  ;;  %vm1137_vm6 = vcmp.eq.s32.totalorder %v2369_v36, %v728_v21  ;;  %v2756_v34 = vcvt.s32.f32 %v926_v17 }
 0x259   : > { %v1794_v18 = vsel %vm1137_vm6, 1.0, %v2060_v35  ;;  %1826 = vmatmul.msk.f32.gmra.mxu1 %vm1137_vm6, %v2059_v7 }
 0x25a   : > { %v1548_v58 = vadd.f32 %v1794_v18, %v1547_v20  ;;  %929 = vmin.xlane.f32.xlu2 %v2756_v34  ;;  %v754_v20 = vcvt.f32.s32 %v2579_v14 }
 0x25b   : > { %v2762_v19 = vpop.xlane.xlu2 %1013  ;;  %v616_v0 = vpop.xlane.xlu0 %615 }
 0x25c   : > { %v738_v27 = vpop.xlane.xlu1 %737  ;;  %vm652_vm7 = vcmp.le.f32.partialorder %v2562_v5, %v616_v0  ;;  %vm1015_vm8 = vcmp.eq.f32.partialorder %v2564_v42, %v2762_v19  ;;  %v755_v14 = vshll.u32 %v754_v20, 16  ;;  %v768_v0 = vcvt.f32.s32 %v2594_v60 }
 0x25d   : > { %v739_v57 = vcvt.f32.s32 %v738_v27  ;;  %v2768_v23 = vsel %vm652_vm7, %v2369_v36, 128  ;;  %v1016_v47 = vsel %vm1015_vm8, %v1011_v33, inf }
 0x25e   : > { %1017 = vmin.xlane.f32.xlu0 %v1016_v47  ;;  %v1094_v55 = vshra.s32 %v2768_v23, 16 }
 0x25f   : > { %v742_v46 = vadd.s32 %v741_v37, %v739_v57  ;;  %v769_v37 = vshll.u32 %v768_v0, 16 }
 0x260   : > { %v2774_v5 = vcvt.s32.f32 %v1094_v55 }
 0x261   : > { %1380 = vst.msk [vmem:[%s2724_s20 + $0x18] sm:$0xff] %vm1376_vm1, %v742_v46  ;;  %vm1138_vm9 = vcmp.eq.s32.totalorder %v2369_v36, %v742_v46  ;;  %v964_v46 = vcvt.f32.s32 %v2611_v38 }
 0x262   : > { %v1795_v42 = vsel %vm1138_vm9, 1.0, %v2060_v35  ;;  %1827 = vmatmul.msk.f32.gmra.mxu1 %vm1138_vm9, %v2059_v7  ;;  %1097 = vmin.xlane.f32.xlu2 %v2774_v5 }
 0x263   : > { %v1549_v15 = vadd.f32 %v1795_v42, %v1548_v58  ;;  %v948_v10 = vpop.xlane.xlu2 %947  ;;  %v752_v2 = vpop.xlane.xlu0 %751  ;;  %v869_v58 = vand.u32 65535, %v2586_v16  ;;  %v965_v22 = vshll.u32 %v964_v46, 16 }
 0x264   : > { %v949_v53 = vcvt.f32.s32 %v948_v10  ;;  %v2782_v21 = vpop.xlane.xlu1 %1027  ;;  %v753_v17 = vcvt.f32.s32 %v752_v2 }
 0x265   : > { %vm1029_vm10 = vcmp.eq.f32.partialorder %v2588_v9, %v2782_v21  ;;  %v871_v27 = vcvt.s32.f32 %v869_v58 }
 0x266   : > { %v2786_v11 = vadd.s32 %v951_v63, %v949_v53  ;;  %v756_v54 = vadd.s32 %v755_v14, %v753_v17  ;;  %v1030_v18 = vsel %vm1029_vm10, %v1025_v40, inf  ;;  %v883_v14 = vand.u32 65535, %v2618_v41 }
 0x267   : > { %1031 = vmin.xlane.f32.xlu0 %v1030_v18  ;;  %v796_v17 = vcvt.f32.s32 %v2629_v48 }
 0x268   : > { %1395 = vst.msk [vmem:[%s2724_s20 + $0x90] sm:$0xff] %vm1376_vm1, %v2786_v11  ;;  %vm1139_vm11 = vcmp.eq.s32.totalorder %v2369_v36, %v756_v54  ;;  %vm1153_vm12 = vcmp.eq.s32.totalorder %v2369_v36, %v2786_v11  ;;  %v885_v48 = vcvt.s32.f32 %v883_v14 }
 0x269   : > { %1381 = vst.msk [vmem:[%s2724_s20 + $0x20] sm:$0xff] %vm1376_vm1, %v756_v54  ;;  %v1796_v9 = vsel %vm1139_vm11, 1.0, %v2060_v35  ;;  %1842 = vmatmul.msk.f32.vlgmr.msra.gmra.mxu3 %vm1153_vm12, %v2059_v7  ;;  %v782_v54 = vcvt.f32.s32 %v2624_v32  ;;  %v797_v32 = vshll.u32 %v796_v17, 16 }
 0x26a   : > { %1828 = vmatmul.msk.f32.gmra.mxu1 %vm1139_vm11, %v2059_v7  ;;  %v1550_v16 = vadd.f32 %v1796_v9, %v1549_v15 }
 0x26b   : > { %v766_v60 = vpop.xlane.xlu2 %765  ;;  %v2804_v33 = vpop.xlane.xlu0 %873  ;;  %v783_v0 = vshll.u32 %v782_v54, 16 }
 0x26c   : > { %v767_v57 = vcvt.f32.s32 %v766_v60  ;;  %vm875_vm13 = vcmp.eq.f32.partialorder %v2596_v8, %v2804_v33  ;;  %v1039_v8 = vcvt.s32.f32 %v1037_v4 }
 0x26d   : > { %v876_v47 = vsel %vm875_vm13, %v871_v27, inf  ;;  %v978_v27 = vcvt.f32.s32 %v2627_v25 }
 0x26e   : > { %v770_v55 = vadd.s32 %v769_v37, %v767_v57  ;;  %877 = vmin.xlane.f32.xlu1 %v876_v47  ;;  %v810_v57 = vcvt.f32.s32 %v2646_v61 }
 0x26f   : > { %v979_v47 = vshll.u32 %v978_v27, 16  ;;  %v838_v27 = vcvt.f32.s32 %v2686_v26 }
 0x270   : > { %1382 = vst.msk [vmem:[%s2724_s20 + $0x28] sm:$0xff] %vm1376_vm1, %v770_v55  ;;  %vm1140_vm14 = vcmp.eq.s32.totalorder %v2369_v36, %v770_v55  ;;  %v811_v46 = vshll.u32 %v810_v57, 16 }
 0x271   : > { %v1797_v30 = vsel %vm1140_vm14, 1.0, %v2060_v35 }
 0x272   : > { %1829 = vmatmul.msk.f32.gmra.mxu1 %vm1140_vm14, %v2059_v7  ;;  %v1551_v20 = vadd.f32 %v1797_v30, %v1550_v16 }
 0x273   : > { %v618_v42 = vpop.xlane.xlu2 %617  ;;  %v2815_v15 = vpop.xlane.xlu0 %1041 }
 0x274   : > { %vm653_vm15 = vcmp.le.f32.partialorder %v2609_v24, %v618_v42  ;;  %v962_v10 = vpop.xlane.xlu1 %961  ;;  %vm1043_vm2 = vcmp.eq.f32.partialorder %v2613_v59, %v2815_v15 }
 0x275   : > { %v2821_v2 = vsel %vm653_vm15, %v2369_v36, 128  ;;  %v963_v38 = vcvt.f32.s32 %v962_v10  ;;  %v1044_v40 = vsel %vm1043_vm2, %v1039_v8, inf }
 0x276   : > { %1045 = vmin.xlane.f32.xlu0 %v1044_v40  ;;  %v1108_v63 = vshra.s32 %v2821_v2, 16  ;;  %v897_v40 = vand.u32 65535, %v2649_v44 }
 0x277   : > { %v2825_v53 = vadd.s32 %v965_v22, %v963_v38 }
 0x278   : > { %v2828_v24 = vcvt.s32.f32 %v1108_v63  ;;  %v1051_v63 = vand.u32 65535, %v2654_v45 }
 0x279   : > { %1396 = vst.msk [vmem:[%s2724_s20 + $0x98] sm:$0xff] %vm1376_vm1, %v2825_v53  ;;  %vm1154_vm3 = vcmp.eq.s32.totalorder %v2369_v36, %v2825_v53 }
 0x27a   : > { %1843 = vmatmul.msk.f32.gmra.mxu3 %vm1154_vm3, %v2059_v7  ;;  %1111 = vmin.xlane.f32.xlu2 %v2828_v24 }
 0x27b   : > { %v2841_v59 = vpop.xlane.xlu2 %887  ;;  %v794_v41 = vpop.xlane.xlu0 %793 }
 0x27c   : > { %v780_v18 = vpop.xlane.xlu1 %779  ;;  %v795_v58 = vcvt.f32.s32 %v794_v41  ;;  %vm889_vm4 = vcmp.eq.f32.partialorder %v2633_v62, %v2841_v59  ;;  %v1053_v41 = vcvt.s32.f32 %v1051_v63 }
 0x27d   : > { %v781_v9 = vcvt.f32.s32 %v780_v18  ;;  %v890_v16 = vsel %vm889_vm4, %v885_v48, inf  ;;  %v899_v48 = vcvt.s32.f32 %v897_v40 }
 0x27e   : > { %v798_v60 = vadd.s32 %v797_v32, %v795_v58  ;;  %891 = vmin.xlane.f32.xlu1 %v890_v16  ;;  %v1065_v16 = vand.u32 65535, %v2675_v49 }
 0x27f   : > { %v784_v37 = vadd.s32 %v783_v0, %v781_v9 }
 0x280   : > { %1384 = vst.msk [vmem:[%s2724_s20 + $0x38] sm:$0xff] %vm1376_vm1, %v798_v60  ;;  %vm1142_vm6 = vcmp.eq.s32.totalorder %v2369_v36, %v798_v60  ;;  %v1067_v49 = vcvt.s32.f32 %v1065_v16 }
 0x281   : > { %1383 = vst.msk [vmem:[%s2724_s20 + $0x30] sm:$0xff] %vm1376_vm1, %v784_v37  ;;  %vm1141_vm5 = vcmp.eq.s32.totalorder %v2369_v36, %v784_v37  ;;  %v1799_v8 = vsel %vm1142_vm6, 1.0, %v2060_v35  ;;  %v824_v37 = vcvt.f32.s32 %v2681_v31  ;;  %v839_v31 = vshll.u32 %v838_v27, 16 }
 0x282   : > { %v1798_v62 = vsel %vm1141_vm5, 1.0, %v2060_v35  ;;  %1830 = vmatmul.msk.f32.gmra.mxu1 %vm1141_vm5, %v2059_v7 }
 0x283   : > { %v1552_v55 = vadd.f32 %v1798_v62, %v1551_v20  ;;  %v808_v4 = vpop.xlane.xlu2 %807  ;;  %v976_v25 = vpop.xlane.xlu0 %975  ;;  %v825_v62 = vshll.u32 %v824_v37, 16 }
 0x284   : > { %v809_v30 = vcvt.f32.s32 %v808_v4  ;;  %v620_v61 = vpop.xlane.xlu1 %619  ;;  %v977_v42 = vcvt.f32.s32 %v976_v25 }
 0x285   : > { %vm654_vm7 = vcmp.le.f32.partialorder %v2657_v50, %v620_v61  ;;  %v1553_v10 = vadd.f32 %v1799_v8, %v1552_v55  ;;  %v992_v50 = vcvt.f32.s32 %v2659_v52 }
 0x286   : > { %v812_v22 = vadd.s32 %v811_v46, %v809_v30  ;;  %v2860_v38 = vsel %vm654_vm7, %v2369_v36, 128  ;;  %v2862_v20 = vadd.s32 %v979_v47, %v977_v42  ;;  %v911_v46 = vand.u32 65535, %v2695_v3 }
 0x287   : > { %v1122_v14 = vshra.s32 %v2860_v38, 16  ;;  %v993_v18 = vshll.u32 %v992_v50, 16  ;;  %v1006_v30 = vcvt.f32.s32 %v2666_v12  ;;  %v1079_v50 = vand.u32 65535, %v2707_v1 }
 0x288   : > { %1385 = vst.msk [vmem:[%s2724_s20 + $0x40] sm:$0xff] %vm1376_vm1, %v812_v22  ;;  %vm1155_vm8 = vcmp.eq.s32.totalorder %v2369_v36, %v2862_v20  ;;  %vm1143_vm9 = vcmp.eq.s32.totalorder %v2369_v36, %v812_v22  ;;  %v913_v12 = vcvt.s32.f32 %v911_v46 }
 0x289   : > { %1397 = vst.msk [vmem:[%s2724_s20 + $0xa0] sm:$0xff] %vm1376_vm1, %v2862_v20  ;;  %1844 = vmatmul.msk.f32.gmra.mxu3 %vm1155_vm8, %v2059_v7  ;;  %v2880_v44 = vcvt.s32.f32 %v1122_v14  ;;  %v1800_v45 = vsel %vm1143_vm9, 1.0, %v2060_v35  ;;  %v1007_v8 = vshll.u32 %v1006_v30, 16 }
 0x28a   : > { %1831 = vmatmul.msk.f32.gmra.mxu1 %vm1142_vm6, %v2059_v7  ;;  %v1554_v17 = vadd.f32 %v1800_v45, %v1553_v10  ;;  %v1081_v45 = vcvt.s32.f32 %v1079_v50  ;;  %v1933_v50 = vld [vmem:[%s2206_s15 + $0x10] sm:$0xff] }
 0x28b   : > { %1125 = vmin.xlane.f32.xlu2 %v2880_v44  ;;  %v2889_v52 = vpop.xlane.xlu2 %1055  ;;  %v2891_v54 = vpop.xlane.xlu0 %901 }
 0x28c   : > { %v990_v32 = vpop.xlane.xlu1 %989  ;;  %vm1057_vm10 = vcmp.eq.f32.partialorder %v2670_v43, %v2889_v52  ;;  %vm903_vm11 = vcmp.eq.f32.partialorder %v2672_v29, %v2891_v54 }
 0x28d   : > { %v991_v58 = vcvt.f32.s32 %v990_v32  ;;  %v1058_v0 = vsel %vm1057_vm10, %v1053_v41, inf  ;;  %v904_v9 = vsel %vm903_vm11, %v899_v48, inf }
 0x28e   : > { %1059 = vmin.xlane.f32.xlu0 %v1058_v0  ;;  %905 = vmin.xlane.f32.xlu1 %v904_v9 }
 0x28f   : > { %v2898_v60 = vadd.s32 %v993_v18, %v991_v58  ;;  %v852_v58 = vcvt.f32.s32 %v2733_v13 }
 0x291   : > { %1398 = vst.msk [vmem:[%s2724_s20 + $0xa8] sm:$0xff] %vm1376_vm1, %v2898_v60  ;;  %vm1156_vm13 = vcmp.eq.s32.totalorder %v2369_v36, %v2898_v60  ;;  %v853_v9 = vshll.u32 %v852_v58, 16  ;;  %v880_v58 = vcvt.f32.s32 %v2804_v33 }
 0x292   : > { %1832 = vmatmul.msk.f32.gmra.mxu1 %vm1143_vm9, %v2059_v7  ;;  %1845 = vmatmul.msk.f32.gmra.mxu3 %vm1156_vm13, %v2059_v7  ;;  %v1813_v11 = vsel %vm1156_vm13, 1.0, %v2060_v35 }
 0x293   : > { %v836_v43 = vpop.xlane.xlu2 %835  ;;  %v2914_v29 = vpop.xlane.xlu0 %1069 }
 0x294   : > { %v822_v26 = vpop.xlane.xlu1 %821  ;;  %v837_v57 = vcvt.f32.s32 %v836_v43  ;;  %vm1071_vm14 = vcmp.eq.f32.partialorder %v2690_v6, %v2914_v29 }
 0x295   : > { %v823_v47 = vcvt.f32.s32 %v822_v26  ;;  %v1072_v55 = vsel %vm1071_vm14, %v1067_v49, inf  ;;  %v925_v49 = vand.u32 65535, %v2749_v28  ;;  %v1093_v28 = vand.u32 65535, %v2768_v23 }
 0x296   : > { %v840_v4 = vadd.s32 %v839_v31, %v837_v57  ;;  %1073 = vmin.xlane.f32.xlu2 %v1072_v55  ;;  %v1931_v31 = vld [vmem:[%s2206_s15] sm:$0xff] }
 0x297   : > { %v826_v25 = vadd.s32 %v825_v62, %v823_v47  ;;  %v927_v62 = vcvt.s32.f32 %v925_v49  ;;  %v1020_v47 = vcvt.f32.s32 %v2762_v19 }
 0x298   : > { %1387 = vst.msk [vmem:[%s2724_s20 + $0x50] sm:$0xff] %vm1376_vm1, %v840_v4  ;;  %vm1145_vm2 = vcmp.eq.s32.totalorder %v2369_v36, %v840_v4 }
 0x299   : > { %1386 = vst.msk [vmem:[%s2724_s20 + $0x48] sm:$0xff] %vm1376_vm1, %v826_v25  ;;  %vm1144_vm15 = vcmp.eq.s32.totalorder %v2369_v36, %v826_v25  ;;  %v1802_v22 = vsel %vm1145_vm2, 1.0, %v2060_v35  ;;  %v1932_v25 = vld [vmem:[%s2206_s15 + $0x8] sm:$0xff] }
 0x29a   : > { %v1801_v6 = vsel %vm1144_vm15, 1.0, %v2060_v35  ;;  %1833 = vmatmul.msk.f32.gmra.mxu1 %vm1144_vm15, %v2059_v7 }
 0x29b   : > { %v1555_v61 = vadd.f32 %v1801_v6, %v1554_v17  ;;  %v1004_v42 = vpop.xlane.xlu2 %1003  ;;  %v866_v17 = vcvt.f32.s32 %v2715_v39 }
 0x29c   : > { %v2928_v10 = vpop.xlane.xlu1 %915  ;;  %v1005_v3 = vcvt.f32.s32 %v1004_v42  ;;  %v1021_v42 = vshll.u32 %v1020_v47, 16  ;;  %v1935_v47 = vld [vmem:[%s2206_s15 + $0x20] sm:$0xff] }
 0x29d   : > { %vm917_vm4 = vcmp.eq.f32.partialorder %v2704_v51, %v2928_v10  ;;  %v1556_v40 = vadd.f32 %v1802_v22, %v1555_v61  ;;  %v867_v48 = vshll.u32 %v866_v17, 16 }
 0x29e   : > { %v2935_v63 = vadd.s32 %v1007_v8, %v1005_v3  ;;  %v918_v14 = vsel %vm917_vm4, %v913_v12, inf }
 0x29f   : > { %919 = vmin.xlane.f32.xlu0 %v918_v14  ;;  %v1034_v14 = vcvt.f32.s32 %v2782_v21 }
 0x2a0   : > { %1399 = vst.msk [vmem:[%s2724_s20 + $0xb0] sm:$0xff] %vm1376_vm1, %v2935_v63  ;;  %vm1157_vm5 = vcmp.eq.s32.totalorder %v2369_v36, %v2935_v63 }
 0x2a1   : > { %1846 = vmatmul.msk.f32.gmra.mxu3 %vm1157_vm5, %v2059_v7  ;;  %v1814_v20 = vsel %vm1157_vm5, 1.0, %v2060_v35 }
 0x2a2   : > { %1834 = vmatmul.msk.f32.gmra.mxu1 %vm1145_vm2, %v2059_v7 }
 0x2a4   : > { %v2950_v51 = vpop.xlane.xlu1 %1083 }
 0x2a5   : > { %vm1085_vm6 = vcmp.eq.f32.partialorder %v2711_v56, %v2950_v51 }
 0x2a6   : > { %v1086_v1 = vsel %vm1085_vm6, %v1081_v45, inf }
 0x2a7   : > { %1087 = vmin.xlane.f32.xlu1 %v1086_v1 }
 0x2ac   : > { %v864_v41 = vpop.xlane.xlu1 %863 }
 0x2ad   : > { %v865_v32 = vcvt.f32.s32 %v864_v41 }
 0x2af   : > { %v868_v18 = vadd.s32 %v867_v48, %v865_v32  ;;  %v1035_v48 = vshll.u32 %v1034_v14, 16 }
 0x2b1   : > { %1389 = vst.msk [vmem:[%s2724_s20 + $0x60] sm:$0xff] %vm1376_vm1, %v868_v18  ;;  %vm1147_vm9 = vcmp.eq.s32.totalorder %v2369_v36, %v868_v18 }
 0x2b2   : > { %v1804_v37 = vsel %vm1147_vm9, 1.0, %v2060_v35 }
 0x2b9   : > { %v850_v0 = vpop.xlane.xlu0 %849 }
 0x2ba   : > { %v851_v16 = vcvt.f32.s32 %v850_v0 }
 0x2bc   : > { %v854_v27 = vadd.s32 %v853_v9, %v851_v16  ;;  %v1934_v9 = vld [vmem:[%s2206_s15 + $0x18] sm:$0xff] }
 0x2be   : > { %1388 = vst.msk [vmem:[%s2724_s20 + $0x58] sm:$0xff] %vm1376_vm1, %v854_v27  ;;  %v1248_v56 = vpop.f32.mrf.mxu1  ;;  %vm1146_vm7 = vcmp.eq.s32.totalorder %v2369_v36, %v854_v27  ;;  %v881_v27 = vshll.u32 %v880_v58, 16  ;;  %v908_v58 = vcvt.f32.s32 %v2891_v54 }
 0x2bf   : > { %1344 = vst.msk [vmem:[%s2962_s29] sm:$0xff] %vm395_vm0, %v1248_v56  ;;  %v1803_v39 = vsel %vm1146_vm7, 1.0, %v2060_v35  ;;  %1835 = vmatmul.msk.f32.gmra.mxu1 %vm1146_vm7, %v2059_v7  ;;  %v1409_v26 = vsub.f32 %v1248_v56, %v1931_v31  ;;  %v1048_v31 = vcvt.f32.s32 %v2815_v15 }
 0x2c0   : > { %v1557_v13 = vadd.f32 %v1803_v39, %v1556_v40  ;;  %v1095_v40 = vcvt.s32.f32 %v1093_v28 }
 0x2c1   : > { %v1441_v4 = vmul.f32 %v1409_v26, %v1409_v26 }
 0x2c2   : > { %v2973_v43 = vadd.f32 %v1804_v37, %v1557_v13 }
 0x2c3   : > { %v1473_v8 = vsel %vm395_vm0, %v1441_v4, 0.0 }
 0x2c7   : > { %1836 = vmatmul.msk.f32.gmra.mxu1 %vm1147_vm9, %v2059_v7 }
 0x2cd   : > { %v2978_v57 = vpop.xlane.xlu2 %929 }
 0x2ce   : > { %v1251_v55 = vpop.f32.mrf.mxu1  ;;  %vm931_vm10 = vcmp.eq.f32.partialorder %v2756_v34, %v2978_v57 }
 0x2cf   : > { %1345 = vst.msk [vmem:[%s2962_s29 + $0x8] sm:$0xff] %vm395_vm0, %v1251_v55  ;;  %v1410_v46 = vsub.f32 %v1251_v55, %v1932_v25  ;;  %v932_v30 = vsel %vm931_vm10, %v927_v62, inf  ;;  %v1107_v25 = vand.u32 65535, %v2821_v2  ;;  %v894_v2 = vcvt.f32.s32 %v2841_v59  ;;  %v1936_v59 = vld [vmem:[%s2206_s15 + $0x28] sm:$0xff] }
 0x2d0   : > { %933 = vmin.xlane.f32.xlu2 %v932_v30 }
 0x2d1   : > { %v1442_v6 = vmul.f32 %v1410_v46, %v1410_v46  ;;  %v1018_v61 = vpop.xlane.xlu0 %1017  ;;  %v1049_v46 = vshll.u32 %v1048_v31, 16  ;;  %v895_v14 = vshll.u32 %v894_v2, 16 }
 0x2d2   : > { %v1019_v19 = vcvt.f32.s32 %v1018_v61 }
 0x2d3   : > { %v1474_v34 = vsel %vm395_vm0, %v1442_v6, 0.0 }
 0x2d4   : > { %v1475_v3 = vadd.f32 %v1474_v34, %v1473_v8  ;;  %v2989_v12 = vadd.s32 %v1021_v42, %v1019_v19 }
 0x2d5   : > { %v2991_v22 = vpop.xlane.xlu2 %1097 }
 0x2d6   : > { %1400 = vst.msk [vmem:[%s2724_s20 + $0xb8] sm:$0xff] %vm1376_vm1, %v2989_v12  ;;  %v1254_v23 = vpop.f32.mrf.mxu1  ;;  %vm1158_vm11 = vcmp.eq.s32.totalorder %v2369_v36, %v2989_v12  ;;  %vm1099_vm14 = vcmp.eq.f32.partialorder %v2774_v5, %v2991_v22 }
 0x2d7   : > { %1346 = vst.msk [vmem:[%s2962_s29 + $0x10] sm:$0xff] %vm395_vm0, %v1254_v23  ;;  %v1411_v45 = vsub.f32 %v1254_v23, %v1933_v50  ;;  %1847 = vmatmul.msk.f32.gmra.mxu3 %vm1158_vm11, %v2059_v7  ;;  %v1100_v1 = vsel %vm1099_vm14, %v1095_v40, inf }
 0x2d8   : > { %1101 = vmin.xlane.f32.xlu0 %v1100_v1 }
 0x2d9   : > { %v1443_v17 = vmul.f32 %v1411_v45, %v1411_v45 }
 0x2da   : > { %v1032_v41 = vpop.xlane.xlu0 %1031 }
 0x2db   : > { %v1476_v5 = vsel %vm395_vm0, %v1443_v17, 0.0  ;;  %v1033_v32 = vcvt.f32.s32 %v1032_v41 }
 0x2dc   : > { %v1477_v21 = vadd.f32 %v1476_v5, %v1475_v3  ;;  %v1121_v5 = vand.u32 65535, %v2860_v38 }
 0x2dd   : > { %v3009_v18 = vadd.s32 %v1035_v48, %v1033_v32  ;;  %v1062_v32 = vcvt.f32.s32 %v2889_v52 }
 0x2df   : > { %1401 = vst.msk [vmem:[%s2724_s20 + $0xc0] sm:$0xff] %vm1376_vm1, %v3009_v18  ;;  %v1257_v0 = vpop.f32.mrf.mxu1  ;;  %vm1159_vm15 = vcmp.eq.s32.totalorder %v2369_v36, %v3009_v18 }
 0x2e0   : > { %1347 = vst.msk [vmem:[%s2962_s29 + $0x18] sm:$0xff] %vm395_vm0, %v1257_v0  ;;  %v1412_v16 = vsub.f32 %v1257_v0, %v1934_v9  ;;  %1848 = vmatmul.msk.f32.gmra.mxu3 %vm1159_vm15, %v2059_v7  ;;  %v1123_v9 = vcvt.s32.f32 %v1121_v5  ;;  %v1816_v60 = vsel %vm1159_vm15, 1.0, %v2060_v35 }
 0x2e1   : > { %v878_v33 = vpop.xlane.xlu1 %877 }
 0x2e2   : > { %v1444_v56 = vmul.f32 %v1412_v16, %v1412_v16  ;;  %v879_v39 = vcvt.f32.s32 %v878_v33  ;;  %v1937_v33 = vld [vmem:[%s2206_s15 + $0x30] sm:$0xff] }
 0x2e4   : > { %v1478_v13 = vsel %vm395_vm0, %v1444_v56, 0.0  ;;  %v882_v37 = vadd.s32 %v881_v27, %v879_v39  ;;  %v1063_v27 = vshll.u32 %v1062_v32, 16  ;;  %v909_v39 = vshll.u32 %v908_v58, 16  ;;  %v1940_v32 = vld [vmem:[%s2206_s15 + $0x48] sm:$0xff] }
 0x2e5   : > { %v1479_v49 = vadd.f32 %v1478_v13, %v1477_v21 }
 0x2e6   : > { %1390 = vst.msk [vmem:[%s2724_s20 + $0x68] sm:$0xff] %vm1376_vm1, %v882_v37  ;;  %vm1148_vm2 = vcmp.eq.s32.totalorder %v2369_v36, %v882_v37 }
 0x2e7   : > { %v1260_v26 = vpop.f32.mrf.mxu1  ;;  %v1805_v62 = vsel %vm1148_vm2, 1.0, %v2060_v35  ;;  %1837 = vmatmul.msk.f32.gmra.mxu1 %vm1148_vm2, %v2059_v7 }
 0x2e8   : > { %1348 = vst.msk [vmem:[%s2962_s29 + $0x20] sm:$0xff] %vm395_vm0, %v1260_v26  ;;  %v1413_v55 = vsub.f32 %v1260_v26, %v1935_v47  ;;  %v1559_v4 = vadd.f32 %v1805_v62, %v2973_v43  ;;  %v1109_v43 = vcvt.s32.f32 %v1107_v25  ;;  %v1076_v47 = vcvt.f32.s32 %v2914_v29  ;;  %v1938_v29 = vld [vmem:[%s2206_s15 + $0x38] sm:$0xff] }
 0x2e9   : > { %v1046_v15 = vpop.xlane.xlu0 %1045 }
 0x2ea   : > { %v1445_v30 = vmul.f32 %v1413_v55, %v1413_v55  ;;  %v1047_v28 = vcvt.f32.s32 %v1046_v15 }
 0x2ec   : > { %v1480_v6 = vsel %vm395_vm0, %v1445_v30, 0.0  ;;  %v3037_v61 = vadd.s32 %v1049_v46, %v1047_v28  ;;  %v3039_v42 = vpop.f32.mrf.mxu3  ;;  %v1077_v30 = vshll.u32 %v1076_v47, 16 }
 0x2ed   : > { %v1481_v19 = vadd.f32 %v1480_v6, %v1479_v49  ;;  %1362 = vst.msk [vmem:[%s2962_s29 + $0x90] sm:$0xff] %vm395_vm0, %v3039_v42  ;;  %v3044_v8 = vpop.xlane.xlu2 %1111 }
 0x2ee   : > { %1402 = vst.msk [vmem:[%s2724_s20 + $0xc8] sm:$0xff] %vm1376_vm1, %v3037_v61  ;;  %vm1160_vm4 = vcmp.eq.s32.totalorder %v2369_v36, %v3037_v61  ;;  %vm1113_vm6 = vcmp.eq.f32.partialorder %v2828_v24, %v3044_v8 }
 0x2ef   : > { %v1263_v34 = vpop.f32.mrf.mxu1  ;;  %1849 = vmatmul.msk.f32.gmra.mxu3 %vm1160_vm4, %v2059_v7  ;;  %v1114_v3 = vsel %vm1113_vm6, %v1109_v43, inf }
 0x2f0   : > { %1349 = vst.msk [vmem:[%s2962_s29 + $0x28] sm:$0xff] %vm395_vm0, %v1263_v34  ;;  %v1414_v40 = vsub.f32 %v1263_v34, %v1936_v59  ;;  %1115 = vmin.xlane.f32.xlu1 %v1114_v3  ;;  %v922_v3 = vcvt.f32.s32 %v2928_v10 }
 0x2f1   : > { %v892_v23 = vpop.xlane.xlu1 %891 }
 0x2f2   : > { %v1446_v50 = vmul.f32 %v1414_v40, %v1414_v40  ;;  %v893_v45 = vcvt.f32.s32 %v892_v23  ;;  %v1939_v40 = vld [vmem:[%s2206_s15 + $0x40] sm:$0xff] }
 0x2f4   : > { %v1482_v1 = vsel %vm395_vm0, %v1446_v50, 0.0  ;;  %v896_v24 = vadd.s32 %v895_v14, %v893_v45  ;;  %v923_v45 = vshll.u32 %v922_v3, 16 }
 0x2f5   : > { %v1483_v17 = vadd.f32 %v1482_v1, %v1481_v19 }
 0x2f6   : > { %1391 = vst.msk [vmem:[%s2724_s20 + $0x70] sm:$0xff] %vm1376_vm1, %v896_v24  ;;  %vm1149_vm7 = vcmp.eq.s32.totalorder %v2369_v36, %v896_v24 }
 0x2f7   : > { %v1806_v41 = vsel %vm1149_vm7, 1.0, %v2060_v35  ;;  %1838 = vmatmul.msk.f32.gmra.mxu1 %vm1149_vm7, %v2059_v7 }
 0x2f8   : > { %v1560_v48 = vadd.f32 %v1806_v41, %v1559_v4 }
 0x2fd   : > { %v3069_v21 = vpop.f32.mrf.mxu3 }
 0x2fe   : > { %1363 = vst.msk [vmem:[%s2962_s29 + $0x98] sm:$0xff] %vm395_vm0, %v3069_v21  ;;  %v3075_v0 = vpop.xlane.xlu2 %1125 }
 0x2ff   : > { %v1266_v16 = vpop.f32.mrf.mxu1  ;;  %vm1127_vm9 = vcmp.eq.f32.partialorder %v2880_v44, %v3075_v0 }
 0x300   : > { %1350 = vst.msk [vmem:[%s2962_s29 + $0x30] sm:$0xff] %vm395_vm0, %v1266_v16  ;;  %v1415_v38 = vsub.f32 %v1266_v16, %v1937_v33  ;;  %v1128_v52 = vsel %vm1127_vm9, %v1123_v9, inf }
 0x301   : > { %1129 = vmin.xlane.f32.xlu2 %v1128_v52  ;;  %v906_v54 = vpop.xlane.xlu1 %905  ;;  %v1060_v56 = vpop.xlane.xlu0 %1059 }
 0x302   : > { %v1447_v13 = vmul.f32 %v1415_v38, %v1415_v38  ;;  %v907_v37 = vcvt.f32.s32 %v906_v54  ;;  %v1061_v49 = vcvt.f32.s32 %v1060_v56 }
 0x304   : > { %v1484_v31 = vsel %vm395_vm0, %v1447_v13, 0.0  ;;  %v910_v44 = vadd.s32 %v909_v39, %v907_v37  ;;  %v3083_v26 = vadd.s32 %v1063_v27, %v1061_v49  ;;  %v1941_v13 = vld [vmem:[%s2206_s15 + $0x50] sm:$0xff] }
 0x305   : > { %v1485_v62 = vadd.f32 %v1484_v31, %v1483_v17 }
 0x306   : > { %1392 = vst.msk [vmem:[%s2724_s20 + $0x78] sm:$0xff] %vm1376_vm1, %v910_v44  ;;  %vm1150_vm10 = vcmp.eq.s32.totalorder %v2369_v36, %v910_v44  ;;  %vm1161_vm14 = vcmp.eq.s32.totalorder %v2369_v36, %v3083_v26 }
 0x307   : > { %1403 = vst.msk [vmem:[%s2724_s20 + $0xd0] sm:$0xff] %vm1376_vm1, %v3083_v26  ;;  %v1269_v55 = vpop.f32.mrf.mxu1  ;;  %v1807_v4 = vsel %vm1150_vm10, 1.0, %v2060_v35  ;;  %1839 = vmatmul.msk.f32.gmra.mxu1 %vm1150_vm10, %v2059_v7  ;;  %1850 = vmatmul.msk.f32.gmra.mxu3 %vm1161_vm14, %v2059_v7  ;;  %v1818_v12 = vsel %vm1161_vm14, 1.0, %v2060_v35  ;;  %v1118_v26 = vcvt.f32.s32 %v3044_v8 }
 0x308   : > { %1351 = vst.msk [vmem:[%s2962_s29 + $0x38] sm:$0xff] %vm395_vm0, %v1269_v55  ;;  %v1416_v25 = vsub.f32 %v1269_v55, %v1938_v29  ;;  %v1561_v15 = vadd.f32 %v1807_v4, %v1560_v48  ;;  %v1090_v48 = vcvt.f32.s32 %v2950_v51  ;;  %v1942_v55 = vld [vmem:[%s2206_s15 + $0x58] sm:$0xff] }
 0x309   : > { %v1074_v46 = vpop.xlane.xlu2 %1073 }
 0x30a   : > { %v1448_v28 = vmul.f32 %v1416_v25, %v1416_v25  ;;  %v1075_v6 = vcvt.f32.s32 %v1074_v46  ;;  %v1091_v51 = vshll.u32 %v1090_v48, 16  ;;  %v936_v25 = vcvt.f32.s32 %v2978_v57 }
 0x30b   : > { %v1811_v48 = vsel %vm1154_vm3, 1.0, %v2060_v35 }
 0x30c   : > { %v1486_v19 = vsel %vm395_vm0, %v1448_v28, 0.0  ;;  %v3104_v43 = vadd.s32 %v1077_v30, %v1075_v6  ;;  %v3106_v2 = vpop.f32.mrf.mxu3  ;;  %v937_v28 = vshll.u32 %v936_v25, 16 }
 0x30d   : > { %v1487_v34 = vadd.f32 %v1486_v19, %v1485_v62  ;;  %1364 = vst.msk [vmem:[%s2962_s29 + $0xa0] sm:$0xff] %vm395_vm0, %v3106_v2 }
 0x30e   : > { %1404 = vst.msk [vmem:[%s2724_s20 + $0xd8] sm:$0xff] %vm1376_vm1, %v3104_v43  ;;  %vm1162_vm2 = vcmp.eq.s32.totalorder %v2369_v36, %v3104_v43  ;;  %v1119_v43 = vshll.u32 %v1118_v26, 16 }
 0x30f   : > { %v1272_v59 = vpop.f32.mrf.mxu1  ;;  %1851 = vmatmul.msk.f32.gmra.mxu3 %vm1162_vm2, %v2059_v7  ;;  %v1819_v61 = vsel %vm1162_vm2, 1.0, %v2060_v35 }
 0x310   : > { %1352 = vst.msk [vmem:[%s2962_s29 + $0x40] sm:$0xff] %vm395_vm0, %v1272_v59  ;;  %v1417_v23 = vsub.f32 %v1272_v59, %v1939_v40 }
 0x312   : > { %v1449_v14 = vmul.f32 %v1417_v23, %v1417_v23  ;;  %v920_v50 = vpop.xlane.xlu0 %919  ;;  %v1104_v23 = vcvt.f32.s32 %v2991_v22 }
 0x313   : > { %v921_v1 = vcvt.f32.s32 %v920_v50 }
 0x314   : > { %v1488_v24 = vsel %vm395_vm0, %v1449_v14, 0.0  ;;  %v1105_v22 = vshll.u32 %v1104_v23, 16 }
 0x315   : > { %v1489_v10 = vadd.f32 %v1488_v24, %v1487_v34  ;;  %v924_v17 = vadd.s32 %v923_v45, %v921_v1  ;;  %v3125_v41 = vpop.f32.mrf.mxu3  ;;  %v1943_v34 = vld [vmem:[%s2206_s15 + $0x60] sm:$0xff]  ;;  %v1810_v1 = vsel %vm1153_vm12, 1.0, %v2060_v35 }
 0x316   : > { %1365 = vst.msk [vmem:[%s2962_s29 + $0xa8] sm:$0xff] %vm395_vm0, %v3125_v41 }
 0x317   : > { %1393 = vst.msk [vmem:[%s2724_s20 + $0x80] sm:$0xff] %vm1376_vm1, %v924_v17  ;;  %v1275_v5 = vpop.f32.mrf.mxu1  ;;  %vm1151_vm6 = vcmp.eq.s32.totalorder %v2369_v36, %v924_v17 }
 0x318   : > { %1353 = vst.msk [vmem:[%s2962_s29 + $0x48] sm:$0xff] %vm395_vm0, %v1275_v5  ;;  %v1418_v58 = vsub.f32 %v1275_v5, %v1940_v32  ;;  %v1808_v9 = vsel %vm1151_vm6, 1.0, %v2060_v35  ;;  %1840 = vmatmul.msk.f32.gmra.mxu1 %vm1151_vm6, %v2059_v7 }
 0x319   : > { %v1562_v16 = vadd.f32 %v1808_v9, %v1561_v15 }
 0x31a   : > { %v1450_v33 = vmul.f32 %v1418_v58, %v1418_v58  ;;  %v1088_v38 = vpop.xlane.xlu1 %1087  ;;  %v1812_v58 = vsel %vm1155_vm8, 1.0, %v2060_v35 }
 0x31b   : > { %v1089_v52 = vcvt.f32.s32 %v1088_v38 }
 0x31c   : > { %v1490_v27 = vsel %vm395_vm0, %v1450_v33, 0.0  ;;  %v1815_v33 = vsel %vm1158_vm11, 1.0, %v2060_v35 }
 0x31d   : > { %v1491_v54 = vadd.f32 %v1490_v27, %v1489_v10  ;;  %v3140_v56 = vadd.s32 %v1091_v51, %v1089_v52  ;;  %v1817_v52 = vsel %vm1160_vm4, 1.0, %v2060_v35 }
 0x31f   : > { %1405 = vst.msk [vmem:[%s2724_s20 + $0xe0] sm:$0xff] %vm1376_vm1, %v3140_v56  ;;  %v1278_v39 = vpop.f32.mrf.mxu1  ;;  %vm1163_vm7 = vcmp.eq.s32.totalorder %v2369_v36, %v3140_v56 }
 0x320   : > { %1354 = vst.msk [vmem:[%s2962_s29 + $0x50] sm:$0xff] %vm395_vm0, %v1278_v39  ;;  %v1419_v37 = vsub.f32 %v1278_v39, %v1941_v13  ;;  %1852 = vmatmul.msk.f32.gmra.mxu3 %vm1163_vm7, %v2059_v7  ;;  %v1820_v39 = vsel %vm1163_vm7, 1.0, %v2060_v35 }
 0x322   : > { %v1451_v49 = vmul.f32 %v1419_v37, %v1419_v37 }
 0x324   : > { %v1492_v31 = vsel %vm395_vm0, %v1451_v49, 0.0  ;;  %v3155_v44 = vpop.f32.mrf.mxu3 }
 0x325   : > { %v1493_v62 = vadd.f32 %v1492_v31, %v1491_v54  ;;  %1366 = vst.msk [vmem:[%s2962_s29 + $0xb0] sm:$0xff] %vm395_vm0, %v3155_v44 }
 0x33c   : > { %v1281_v47 = vpop.f32.mrf.mxu1 }
 0x33d   : > { %1355 = vst.msk [vmem:[%s2962_s29 + $0x58] sm:$0xff] %vm395_vm0, %v1281_v47  ;;  %v1420_v4 = vsub.f32 %v1281_v47, %v1942_v55  ;;  %v1944_v55 = vld [vmem:[%s2206_s15 + $0x68] sm:$0xff] }
 0x33f   : > { %v1452_v29 = vmul.f32 %v1420_v4, %v1420_v4 }
 0x341   : > { %v1494_v15 = vsel %vm395_vm0, %v1452_v29, 0.0 }
 0x342   : > { %v1495_v46 = vadd.f32 %v1494_v15, %v1493_v62 }
 0x343   : > { %v934_v30 = vpop.xlane.xlu2 %933 }
 0x344   : > { %v935_v6 = vcvt.f32.s32 %v934_v30  ;;  %v1284_v19 = vpop.f32.mrf.mxu1 }
 0x345   : > { %1356 = vst.msk [vmem:[%s2962_s29 + $0x60] sm:$0xff] %vm395_vm0, %v1284_v19  ;;  %v1421_v3 = vsub.f32 %v1284_v19, %v1943_v34 }
 0x346   : > { %v938_v59 = vadd.s32 %v937_v28, %v935_v6  ;;  %v1132_v28 = vcvt.f32.s32 %v3075_v0 }
 0x347   : > { %v1453_v40 = vmul.f32 %v1421_v3, %v1421_v3 }
 0x348   : > { %1394 = vst.msk [vmem:[%s2724_s20 + $0x88] sm:$0xff] %vm1376_vm1, %v938_v59  ;;  %vm1152_vm9 = vcmp.eq.s32.totalorder %v2369_v36, %v938_v59  ;;  %v1133_v3 = vshll.u32 %v1132_v28, 16 }
 0x349   : > { %v1496_v57 = vsel %vm395_vm0, %v1453_v40, 0.0  ;;  %v1809_v14 = vsel %vm1152_vm9, 1.0, %v2060_v35  ;;  %1841 = vmatmul.msk.f32.gmra.mxu1 %vm1152_vm9, %v2059_v7  ;;  %v1945_v40 = vld [vmem:[%s2206_s15 + $0x70] sm:$0xff] }
 0x34a   : > { %v1497_v50 = vadd.f32 %v1496_v57, %v1495_v46  ;;  %v1563_v45 = vadd.f32 %v1809_v14, %v1562_v16 }
 0x34b   : > { %v1102_v24 = vpop.xlane.xlu0 %1101 }
 0x34c   : > { %v1564_v10 = vadd.f32 %v1810_v1, %v1563_v45  ;;  %v1103_v17 = vcvt.f32.s32 %v1102_v24 }
 0x34e   : > { %v1565_v5 = vadd.f32 %v1811_v48, %v1564_v10  ;;  %v1106_v32 = vadd.s32 %v1105_v22, %v1103_v17 }
 0x350   : > { %v1566_v9 = vadd.f32 %v1812_v58, %v1565_v5  ;;  %1406 = vst.msk [vmem:[%s2724_s20 + $0xe8] sm:$0xff] %vm1376_vm1, %v1106_v32  ;;  %vm1164_vm12 = vcmp.eq.s32.totalorder %v2369_v36, %v1106_v32 }
 0x351   : > { %1853 = vmatmul.msk.f32.gmra.mxu3 %vm1164_vm12, %v2059_v7  ;;  %v1821_v37 = vsel %vm1164_vm12, 1.0, %v2060_v35 }
 0x352   : > { %v1567_v53 = vadd.f32 %v1813_v11, %v1566_v9 }
 0x354   : > { %v1568_v16 = vadd.f32 %v1814_v20, %v1567_v53 }
 0x356   : > { %v1569_v38 = vadd.f32 %v1815_v33, %v1568_v16  ;;  %v1947_v16 = vld [vmem:[%s2206_s15 + $0x80] sm:$0xff] }
 0x358   : > { %v1570_v51 = vadd.f32 %v1816_v60, %v1569_v38 }
 0x35a   : > { %v1571_v63 = vadd.f32 %v1817_v52, %v1570_v51  ;;  %v3213_v27 = vpop.f32.mrf.mxu3 }
 0x35b   : > { %1367 = vst.msk [vmem:[%s2962_s29 + $0xb8] sm:$0xff] %vm395_vm0, %v3213_v27 }
 0x35c   : > { %v1572_v18 = vadd.f32 %v1818_v12, %v1571_v63  ;;  %v1948_v63 = vld [vmem:[%s2206_s15 + $0x90] sm:$0xff] }
 0x35d   : > { %v1427_v12 = vsub.f32 %v3039_v42, %v1948_v63 }
 0x35e   : > { %v1573_v54 = vadd.f32 %v1819_v61, %v1572_v18  ;;  %v1949_v61 = vld [vmem:[%s2206_s15 + $0x98] sm:$0xff] }
 0x360   : > { %v1574_v13 = vadd.f32 %v1820_v39, %v1573_v54  ;;  %v1428_v54 = vsub.f32 %v3069_v21, %v1949_v61  ;;  %v1950_v39 = vld [vmem:[%s2206_s15 + $0x88] sm:$0xff] }
 0x362   : > { %v1575_v49 = vadd.f32 %v1821_v37, %v1574_v13  ;;  %v1459_v13 = vmul.f32 %v1427_v12, %v1427_v12  ;;  %v1951_v37 = vld [vmem:[%s2206_s15 + $0xa0] sm:$0xff]  ;;  %v1961_v12 = vld [vmem:[%s2206_s15 + $0xf0] sm:$0xff] }
 0x363   : > { %v3234_v31 = vpop.f32.mrf.mxu3  ;;  %v1116_v62 = vpop.xlane.xlu1 %1115 }
 0x364   : > { %1368 = vst.msk [vmem:[%s2962_s29 + $0xc0] sm:$0xff] %vm395_vm0, %v3234_v31  ;;  %v1117_v47 = vcvt.f32.s32 %v1116_v62  ;;  %v1287_v56 = vpop.f32.mrf.mxu1  ;;  %v1508_v21 = vsel %vm395_vm0, %v1459_v13, 0.0 }
 0x365   : > { %1357 = vst.msk [vmem:[%s2962_s29 + $0x68] sm:$0xff] %vm395_vm0, %v1287_v56  ;;  %v1422_v8 = vsub.f32 %v1287_v56, %v1944_v55 }
 0x366   : > { %v1120_v4 = vadd.s32 %v1119_v43, %v1117_v47  ;;  %v1460_v43 = vmul.f32 %v1428_v54, %v1428_v54  ;;  %v1952_v47 = vld [vmem:[%s2206_s15 + $0xa8] sm:$0xff] }
 0x367   : > { %v1454_v29 = vmul.f32 %v1422_v8, %v1422_v8  ;;  %v1430_v42 = vsub.f32 %v3125_v41, %v1952_v47 }
 0x368   : > { %1407 = vst.msk [vmem:[%s2724_s20 + $0xf0] sm:$0xff] %vm1376_vm1, %v1120_v4  ;;  %vm1165_vm3 = vcmp.eq.s32.totalorder %v2369_v36, %v1120_v4  ;;  %v1953_v4 = vld [vmem:[%s2206_s15 + $0xb0] sm:$0xff] }
 0x369   : > { %v1498_v25 = vsel %vm395_vm0, %v1454_v29, 0.0  ;;  %v1822_v15 = vsel %vm1165_vm3, 1.0, %v2060_v35  ;;  %1854 = vmatmul.msk.f32.gmra.mxu3 %vm1165_vm3, %v2059_v7  ;;  %v1431_v29 = vsub.f32 %v3155_v44, %v1953_v4 }
 0x36a   : > { %v1499_v46 = vadd.f32 %v1498_v25, %v1497_v50  ;;  %v1576_v30 = vadd.f32 %v1822_v15, %v1575_v49  ;;  %v1429_v49 = vsub.f32 %v3106_v2, %v1951_v37  ;;  %v1510_v15 = vsel %vm395_vm0, %v1460_v43, 0.0  ;;  %v1962_v37 = vld [vmem:[%s2206_s15 + $0xf8] sm:$0xff] }
 0x36b   : > { %v1462_v2 = vmul.f32 %v1430_v42, %v1430_v42 }
 0x36c   : > { %v1461_v8 = vmul.f32 %v1429_v49, %v1429_v49 }
 0x36d   : > { %v1514_v44 = vsel %vm395_vm0, %v1462_v2, 0.0 }
 0x36e   : > { %v1512_v41 = vsel %vm395_vm0, %v1461_v8, 0.0 }
 0x372   : > { %v3249_v6 = vpop.f32.mrf.mxu3 }
 0x373   : > { %1369 = vst.msk [vmem:[%s2962_s29 + $0xc8] sm:$0xff] %vm395_vm0, %v3249_v6 }
 0x374   : > { %v1130_v19 = vpop.xlane.xlu2 %1129  ;;  %v1290_v34 = vpop.f32.mrf.mxu1 }
 0x375   : > { %v1131_v59 = vcvt.f32.s32 %v1130_v19  ;;  %1358 = vst.msk [vmem:[%s2962_s29 + $0x70] sm:$0xff] %vm395_vm0, %v1290_v34  ;;  %v1423_v23 = vsub.f32 %v1290_v34, %v1945_v40  ;;  %v1463_v19 = vmul.f32 %v1431_v29, %v1431_v29  ;;  %v1955_v34 = vld [vmem:[%s2206_s15 + $0xc0] sm:$0xff] }
 0x377   : > { %v1134_v57 = vadd.s32 %v1133_v3, %v1131_v59  ;;  %v1455_v14 = vmul.f32 %v1423_v23, %v1423_v23  ;;  %v1433_v3 = vsub.f32 %v3234_v31, %v1955_v34  ;;  %v1956_v23 = vld [vmem:[%s2206_s15 + $0xc8] sm:$0xff] }
 0x379   : > { %1408 = vst.msk [vmem:[%s2724_s20 + $0xf8] sm:$0xff] %vm1376_vm1, %v1134_v57  ;;  %v1500_v0 = vsel %vm395_vm0, %v1455_v14, 0.0  ;;  %vm1166_vm8 = vcmp.eq.s32.totalorder %v2369_v36, %v1134_v57  ;;  %v1946_v36 = vld [vmem:[%s2206_s15 + $0x78] sm:$0xff]  ;;  %v1434_v57 = vsub.f32 %v3249_v6, %v1956_v23 }
 0x37a   : > { %v1501_v50 = vadd.f32 %v1500_v0, %v1499_v46  ;;  %v1823_v45 = vsel %vm1166_vm8, 1.0, %v2060_v35  ;;  %1855 = vmatmul.msk.f32.gmra.mxu3 %vm1166_vm8, %v2059_v7  ;;  %v1954_v46 = vld [vmem:[%s2206_s15 + $0xb8] sm:$0xff] }
 0x37b   : > { %v1577_v1 = vadd.f32 %v1823_v45, %v1576_v30  ;;  %v1432_v30 = vsub.f32 %v3213_v27, %v1954_v46  ;;  %v1516_v27 = vsel %vm395_vm0, %v1463_v19, 0.0  ;;  %v1957_v45 = vld [vmem:[%s2206_s15 + $0xd0] sm:$0xff] }
 0x37d   : > { %v1578_v24 = vrot.slane %v1577_v1, 4  ;;  %v1464_v40 = vmul.f32 %v1432_v30, %v1432_v30 }
 0x37f   : > { %v1579_v22 = vadd.f32 %v1578_v24, %v1577_v1  ;;  %v1518_v31 = vsel %vm395_vm0, %v1464_v40, 0.0 }
 0x381   : > { %v1580_v10 = vrot.slane %v1579_v22, 2 }
 0x383   : > { %v1581_v17 = vadd.f32 %v1580_v10, %v1579_v22  ;;  %v1466_v22 = vmul.f32 %v1434_v57, %v1434_v57  ;;  %v1958_v10 = vld [vmem:[%s2206_s15 + $0xd8] sm:$0xff] }
 0x384   : > { %v1293_v48 = vpop.f32.mrf.mxu1 }
 0x385   : > { %1359 = vst.msk [vmem:[%s2962_s29 + $0x78] sm:$0xff] %vm395_vm0, %v1293_v48  ;;  %v1424_v35 = vsub.f32 %v1293_v48, %v1946_v36  ;;  %v1582_v5 = vrot.slane %v1581_v17, 1 }
 0x387   : > { %v1456_v7 = vmul.f32 %v1424_v35, %v1424_v35  ;;  %v1583_v32 = vadd.f32 %v1582_v5, %v1581_v17  ;;  %v1959_v35 = vld [vmem:[%s2206_s15 + $0xe0] sm:$0xff] }
 0x389   : > { %v1502_v58 = vsel %vm395_vm0, %v1456_v7, 0.0  ;;  %1584 = vst [vmem:[%s268_s10] sm:$0x1] %v1583_v32  ;;  %v1522_v32 = vsel %vm395_vm0, %v1466_v22, 0.0 }
 0x38a   : > { %v1503_v9 = vadd.f32 %v1502_v58, %v1501_v50  ;;  %v1326_v11 = vpop.f32.mrf.mxu3  ;;  %v1465_v50 = vmul.f32 %v1433_v3, %v1433_v3 }
 0x38b   : > { %1370 = vst.msk [vmem:[%s2962_s29 + $0xd0] sm:$0xff] %vm395_vm0, %v1326_v11  ;;  %v1435_v1 = vsub.f32 %v1326_v11, %v1957_v45 }
 0x38c   : > { %v1520_v36 = vsel %vm395_vm0, %v1465_v50, 0.0 }
 0x38d   : > { %v1467_v6 = vmul.f32 %v1435_v1, %v1435_v1 }
 0x38f   : > { %v1524_v11 = vsel %vm395_vm0, %v1467_v6, 0.0 }
 0x392   : > { %v1329_v53 = vpop.f32.mrf.mxu3 }
 0x393   : > { %1371 = vst.msk [vmem:[%s2962_s29 + $0xd8] sm:$0xff] %vm395_vm0, %v1329_v53  ;;  %v1436_v17 = vsub.f32 %v1329_v53, %v1958_v10 }
 0x395   : > { %v1296_v20 = vpop.f32.mrf.mxu1  ;;  %v1468_v58 = vmul.f32 %v1436_v17, %v1436_v17 }
 0x396   : > { %1360 = vst.msk [vmem:[%s2962_s29 + $0x80] sm:$0xff] %vm395_vm0, %v1296_v20  ;;  %v1425_v33 = vsub.f32 %v1296_v20, %v1947_v16 }
 0x397   : > { %v1526_v53 = vsel %vm395_vm0, %v1468_v58, 0.0 }
 0x398   : > { %v1457_v38 = vmul.f32 %v1425_v33, %v1425_v33 }
 0x39a   : > { %v1504_v60 = vsel %vm395_vm0, %v1457_v38, 0.0 }
 0x39b   : > { %v1505_v51 = vadd.f32 %v1504_v60, %v1503_v9 }
 0x3a3   : > { %v1332_v52 = vpop.f32.mrf.mxu3 }
 0x3a4   : > { %1372 = vst.msk [vmem:[%s2962_s29 + $0xe0] sm:$0xff] %vm395_vm0, %v1332_v52  ;;  %v1437_v5 = vsub.f32 %v1332_v52, %v1959_v35  ;;  %v1960_v52 = vld [vmem:[%s2206_s15 + $0xe8] sm:$0xff]  ;;  %s1977_s15 = sshra.s32 %s1634_s16, 4  ;;  %s1978_s15 = int_to_ptr.hbm [resolvable:$true] %s1977_s15 }
 0x3a5   : > { %s1979_s18 = scalar_lea.hbm %s1978_s15, 1  ;;  %p1984_p0 = scmp.lt.s32.totalorder %s1978_s15, %s3385_s6 }
 0x3a6   : > { %v1469_v20 = vmul.f32 %v1437_v5, %v1437_v5  ;;  %p1980_p11 = scmp.ne.s32.totalorder %s1978_s15, %s1979_s18  ;;  %p1985_p1 = scmp.lt.s32.totalorder %s1983_s26, %s1979_s18 }
 0x3a8   : > { %v1528_v38 = vsel %vm395_vm0, %v1469_v20, 0.0  ;;  %p1981_p12 = pnand %p1980_p11, %p2134_p5  ;;  %p1986_p2 = por %p1985_p1, %p1984_p0 }
 0x3aa   : > { %p1982_p13 = pneg %p1981_p12 }
 0x3ac   : > { %p1987_p3 = pnand %p1986_p2, %p1982_p13 }
 0x3c6   : > { %v1299_v18 = vpop.f32.mrf.mxu1 }
 0x3c7   : > { %1361 = vst.msk [vmem:[%s2962_s29 + $0x88] sm:$0xff] %vm395_vm0, %v1299_v18  ;;  %v1426_v26 = vsub.f32 %v1299_v18, %v1950_v39 }
 0x3c9   : > { %v1458_v62 = vmul.f32 %v1426_v26, %v1426_v26 }
 0x3cb   : > { %v1506_v56 = vsel %vm395_vm0, %v1458_v62, 0.0 }
 0x3cc   : > { %v1507_v55 = vadd.f32 %v1506_v56, %v1505_v51 }
 0x3ce   : > { %v1509_v25 = vadd.f32 %v1508_v21, %v1507_v55 }
 0x3d0   : > { %v1511_v28 = vadd.f32 %v1510_v15, %v1509_v25 }
 0x3d2   : > { %v1513_v59 = vadd.f32 %v1512_v41, %v1511_v28 }
 0x3d4   : > { %v1515_v14 = vadd.f32 %v1514_v44, %v1513_v59  ;;  %v1335_v0 = vpop.f32.mrf.mxu3 }
 0x3d5   : > { %1373 = vst.msk [vmem:[%s2962_s29 + $0xe8] sm:$0xff] %vm395_vm0, %v1335_v0  ;;  %v1438_v63 = vsub.f32 %v1335_v0, %v1960_v52 }
 0x3d6   : > { %v1517_v24 = vadd.f32 %v1516_v27, %v1515_v14 }
 0x3d7   : > { %v1470_v61 = vmul.f32 %v1438_v63, %v1438_v63 }
 0x3d8   : > { %v1519_v48 = vadd.f32 %v1518_v31, %v1517_v24 }
 0x3d9   : > { %v1530_v26 = vsel %vm395_vm0, %v1470_v61, 0.0 }
 0x3da   : > { %v1521_v7 = vadd.f32 %v1520_v36, %v1519_v48 }
 0x3dc   : > { %v1523_v9 = vadd.f32 %v1522_v32, %v1521_v7 }
 0x3de   : > { %v1525_v16 = vadd.f32 %v1524_v11, %v1523_v9 }
 0x3e0   : > { %v1527_v33 = vadd.f32 %v1526_v53, %v1525_v16 }
 0x3e2   : > { %v1529_v60 = vadd.f32 %v1528_v38, %v1527_v33 }
 0x3e4   : > { %v1531_v62 = vadd.f32 %v1530_v26, %v1529_v60 }
 0x3ec   : > { %v1338_v51 = vpop.f32.mrf.mxu3 }
 0x3ed   : > { %1374 = vst.msk [vmem:[%s2962_s29 + $0xf0] sm:$0xff] %vm395_vm0, %v1338_v51  ;;  %v1439_v18 = vsub.f32 %v1338_v51, %v1961_v12 }
 0x3ef   : > { %v1471_v54 = vmul.f32 %v1439_v18, %v1439_v18 }
 0x3f1   : > { %v1532_v13 = vsel %vm395_vm0, %v1471_v54, 0.0 }
 0x3f2   : > { %v1533_v47 = vadd.f32 %v1532_v13, %v1531_v62 }
 0x3fd   : > { %v1341_v39 = vpop.f32.mrf.mxu3 }
 0x3fe   : > { %1375 = vst.msk [vmem:[%s2962_s29 + $0xf8] sm:$0xff] %vm395_vm0, %v1341_v39  ;;  %v1440_v49 = vsub.f32 %v1341_v39, %v1962_v37 }
 0x400   : > { %v1472_v43 = vmul.f32 %v1440_v49, %v1440_v49 }
 0x402   : > { %v1534_v42 = vsel %vm395_vm0, %v1472_v43, 0.0 }
 0x403   : > { %v1535_v56 = vadd.f32 %v1534_v42, %v1533_v47 }
 0x405   : > { %1536 = vadd.xlane.f32.xlu0 %v1535_v56 }
 0x406   : > { %1990 = shalt.err (!%p1987_p3)
}
 0x407   : > { %1885 = dma.vmem_to_hbm [thread:$0]  (%p2134_p5), %s1632_s14, 16, %s1634_s16, %s1600_s17  }
 0x408   : > { %s1616_s12 = scalar_lea.hbm %s3384_s5, %s2117_s25  ;;  %s262_s13 = scalar_lea.vmem [#allocation2], %s3264_s9 }
 0x409   : > { %s1618_s15 = sshll.u32 %s262_s13, 4  ;;  %s1620_s18 = sshll.u32 %s1616_s12, 4  ;;  %s1619_s15 = int_to_ptr.vmem [resolvable:$true] %s1618_s15  ;;  %s1621_s18 = int_to_ptr.hbm [resolvable:$true] %s1620_s18 }
 0x40a   : > { %s1596_s14 = scalar_lea.sflag [#allocation3], %s3264_s9  ;;  %s2005_s16 = sshra.s32 %s1621_s18, 4  ;;  %s2006_s16 = int_to_ptr.hbm [resolvable:$true] %s2005_s16 }
 0x40b   : > { %s2007_s17 = scalar_lea.hbm %s2006_s16, 1  ;;  %s2011_s25 = scalar_lea.hbm %s3384_s5, 2 }
 0x40c   : > { %p2008_p4 = scmp.ne.s32.totalorder %s2006_s16, %s2007_s17  ;;  %p2012_p9 = scmp.lt.s32.totalorder %s2006_s16, %s3384_s5 }
 0x40d   : > { %p2013_p10 = scmp.lt.s32.totalorder %s2011_s25, %s2007_s17 }
 0x40e   : > { %p2009_p7 = pnand %p2008_p4, %p2134_p5 }
 0x40f   : > { %p2014_p11 = por %p2013_p10, %p2012_p9 }
 0x410   : > { %p2010_p8 = pneg %p2009_p7 }
 0x412   : > { %p2015_p12 = pnand %p2014_p11, %p2010_p8 }
 0x478   : > { %v1537_v55 = vpop.xlane.xlu0 %1536 }
 0x479   : > { %v1538_v21 = vrot.slane %v1537_v55, 4 }
 0x47b   : > { %v1539_v8 = vadd.f32 %v1538_v21, %v1537_v55 }
 0x47d   : > { %v1540_v4 = vrot.slane %v1539_v8, 2 }
 0x47f   : > { %v1541_v29 = vadd.f32 %v1540_v4, %v1539_v8 }
 0x481   : > { %v1542_v25 = vrot.slane %v1541_v29, 1 }
 0x483   : > { %v1543_v15 = vadd.f32 %v1542_v25, %v1541_v29 }
 0x485   : > { %1882 = vpush %v1543_v15 }
 0x4b6   : > { %s1883_s19 = spop %1882 }
 0x4b7   : > { %v1545_v2 = vstv %s1883_s19 }
 0x4b8   : > { %1546 = vst [vmem:[%s262_s13] sm:$0x1] %v1545_v2 }
 0x4b9   : > { %2018 = shalt.err (!%p2015_p12)
}
 0x4ba   : > { %1884 = dma.vmem_to_hbm [thread:$0]  (%p2134_p5), %s1619_s15, 16, %s1621_s18, %s1596_s14  }
 0x4bb PF: > { %p1895_p13 = scmp.ge.s32.totalorder %s2057_s24, 2  ;;  %s1661_s9 = sand.u32 1, %s2045_s21  }
 0x4bc   : > { %s1662_s10 = scalar_lea.sflag [#allocation3], %s1661_s9 }
 0x4bd   : > { %p1889_p0 = pnand %p1895_p13, %p2138_p6 }
 0x4bf   : > { %p1890_p1 = pneg %p1889_p0 }
 0x4c1   : > { %2036 = dma.done.wait (%p1890_p1), %s1662_s10, 16  }
 0x4c2   : > { %2038 = vsyncadd (%p1890_p1), %s1662_s10, 4294967280  ;;  %s1671_s11 = scalar_lea.sflag [#allocation5], %s1661_s9 }
 0x4c3   : > { %2040 = dma.done.wait (%p1890_p1), %s1671_s11, 16  }
 0x4c4   : > { %2042 = vsyncadd (%p1890_p1), %s1671_s11, 4294967280  ;;  %p20_p5 = scmp.ge.s32.totalorder %s2121_s27, 4   ;;  %s3388_s21 = smov %s2049_s22 }
 0x4c5   : > { %s3389_s22 = smov %s2053_s23  ;;  %s3390_s23 = smov %s2132_s30 }
 0x4c6   : > { %s3391_s24 = smov %s2121_s27  ;;  %22 = sbr.rel (!%p20_p5) target bundleno = 5 (0x5), region = 108 }
 0x4cb   :  { %1676 = vsyncpa [#allocation3], 1 }
 0x4cc   :  { %1678 = vsyncpa [#allocation3 + $0x1], 1 }
 0x4cd   :  { %1679 = vsyncpa [#allocation5], 1 }
 0x4ce   :  { %1681 = vsyncpa [#allocation5 + $0x1], 1 }

</bundles_post_ra>
